<compile_context>
chip_gen: v7x
topology: tpu7x:2x2x1
jax: 0.10.0
libtpu: 0.0.40
codegen_flags: <defaults>
</compile_context>

<pallas_src>
import functools

import jax
import jax.numpy as jnp
from jax import lax
from jax.experimental import pallas as pl
from jax.experimental.pallas import tpu as pltpu

_LANE = 128


def _round_up(x, m):
    return (x + m - 1) // m * m


# --------------------------------------------------------------------------
# Kernel A: serial LSTM recurrence, tiled over the sequence (grid axis is
# "arbitrary" -> sequential; h/c persist across tiles via tiny VMEM scratch).
# --------------------------------------------------------------------------
def _lstm_kernel(
    z_ref,          # (TS, R)       tile of inputs
    wih_ref,        # (R, 4*Hp)     W_ih^T, gate blocks lane-aligned
    whh_ref,        # (H, 4*Hp)     W_hh^T, gate blocks lane-aligned
    b_ref,          # (1, 4*Hp)     b_ih + b_hh, gate blocks lane-aligned
    hs_ref,         # (TS, H)       output hidden states for this tile
    pre_scr,        # (TS, 4*Hp)    scratch: input projection for the tile
    h_scr,          # (1, H)        carry across sequence tiles
    c_scr,          # (1, H)        carry across sequence tiles
    *,
    hidden: int,
    hidden_pad: int,
    seq_tile: int,
    unroll,
):
    H, Hp, TS = hidden, hidden_pad, seq_tile

    @pl.when(pl.program_id(0) == 0)
    def _():
        h_scr[...] = jnp.zeros_like(h_scr)
        c_scr[...] = jnp.zeros_like(c_scr)

    # Input projection for all timesteps of this tile at once (one MXU pass).
    pre_scr[...] = (
        jnp.dot(z_ref[...], wih_ref[...], preferred_element_type=jnp.float32)
        + b_ref[...]
    )

    def step(t, carry):
        h, c = carry                                     # (1, H) values in vregs
        gates = pre_scr[pl.ds(t, 1), :] + jnp.dot(
            h, whh_ref[...], preferred_element_type=jnp.float32
        )                                                # (1, 4*Hp)
        # Each gate block starts at a multiple of 128 lanes -> whole-vreg slices.
        i_g = jax.nn.sigmoid(gates[:, 0 * Hp:0 * Hp + H])
        f_g = jax.nn.sigmoid(gates[:, 1 * Hp:1 * Hp + H])
        g_g = jnp.tanh(gates[:, 2 * Hp:2 * Hp + H])
        o_g = jax.nn.sigmoid(gates[:, 3 * Hp:3 * Hp + H])
        c_new = f_g * c + i_g * g_g
        h_new = o_g * jnp.tanh(c_new)
        hs_ref[pl.ds(t, 1), :] = h_new
        return (h_new, c_new)

    # h/c carried as values (no per-step VMEM round trip); unrolled so the
    # scheduler sees across iterations.  (t=0's h==0 matvec is not peeled so
    # the tiled carry stays uniform across sequence tiles.)
    h_fin, c_fin = lax.fori_loop(
        0, TS, step, (h_scr[...], c_scr[...]), unroll=unroll
    )
    h_scr[...] = h_fin
    c_scr[...] = c_fin


# --------------------------------------------------------------------------
# Kernel B: five heads fused into one lane-dense matmul + per-segment softmax,
# "parallel" grid over sequence tiles (pipelined / sharded across TCs).
# --------------------------------------------------------------------------
def _heads_kernel(hs_ref, w_ref, b_ref, out_ref, *, segments):
    logits = (
        jnp.dot(hs_ref[...], w_ref[...], preferred_element_type=jnp.float32)
        + b_ref[...]
    )                                                    # (TS, OUTP)
    out_ref[...] = jnp.zeros_like(out_ref)               # zero pad lanes once
    for lo, hi in segments:
        seg = logits[:, lo:hi]
        m = jnp.max(seg, axis=-1, keepdims=True)
        e = jnp.exp(seg - m)
        out_ref[:, lo:hi] = e / jnp.sum(e, axis=-1, keepdims=True)


# --------------------------------------------------------------------------
# Wrapper
# --------------------------------------------------------------------------
def gcn_decoder_forward(z, params, *, seq_tile=None):
    """z: (seq_len, rep_size) float32.  Returns (tu, tv, lu, lv, le), each
    of shape (1, seq_len, head_size) like the PyTorch module (eval mode)."""
    S, R = z.shape
    H = params["w_hh_t"].shape[0]
    T = params["w_tu"].shape[1]
    L = params["w_lu"].shape[1]
    E = params["w_le"].shape[1]
    Hp = _round_up(H, _LANE)

    # ---- pick a sequence tile (bounds VMEM per tile; pipelines HBM I/O) ----
    if seq_tile is not None and S % seq_tile == 0:
        ts = seq_tile
    elif S <= 256:
        ts = S
    else:
        ts = S
        for cand in range(256, 7, -8):
            if S % cand == 0:
                ts = cand
                break
    n_tiles = S // ts
    unroll = True if ts <= 16 else 8

    # ---- re-layout LSTM weights: each gate block padded to Hp lanes ----
    def pad_gate_cols(w):  # (X, 4H) -> (X, 4Hp), zeros in the new lanes
        X = w.shape[0]
        w4 = w.reshape(X, 4, H)
        return jnp.pad(w4, ((0, 0), (0, 0), (0, Hp - H))).reshape(X, 4 * Hp)

    wih_p = pad_gate_cols(params["w_ih_t"])   # (R, 4Hp)
    whh_p = pad_gate_cols(params["w_hh_t"])   # (H, 4Hp)  (contraction dim stays H)
    b_p = pad_gate_cols(params["b_lstm"])     # (1, 4Hp)

    # ---- fuse the five heads into one lane-dense weight / bias ----
    w_all = jnp.concatenate(
        [params["w_tu"], params["w_tv"], params["w_lu"],
         params["w_lv"], params["w_le"]], axis=1)        # (H, OUT)
    b_all = jnp.concatenate(
        [params["b_tu"], params["b_tv"], params["b_lu"],
         params["b_lv"], params["b_le"]], axis=1)        # (1, OUT)
    OUT = w_all.shape[1]
    OUTP = _round_up(OUT, _LANE)
    w_all = jnp.pad(w_all, ((0, 0), (0, OUTP - OUT)))
    b_all = jnp.pad(b_all, ((0, 0), (0, OUTP - OUT)))

    widths = (T, T, L, L, E)
    segments, off = [], 0
    for w in widths:
        segments.append((off, off + w))
        off += w
    segments = tuple(segments)

    # ---- kernel A: LSTM recurrence ----
    lstm_kernel = functools.partial(
        _lstm_kernel, hidden=H, hidden_pad=Hp, seq_tile=ts, unroll=unroll)
    hs = pl.pallas_call(
        lstm_kernel,
        out_shape=jax.ShapeDtypeStruct((S, H), jnp.float32),
        grid_spec=pltpu.PrefetchScalarGridSpec(
            num_scalar_prefetch=0,
            grid=(n_tiles,),
            in_specs=[
                pl.BlockSpec((ts, R), lambda i: (i, 0)),
                pl.BlockSpec((R, 4 * Hp), lambda i: (0, 0)),
                pl.BlockSpec((H, 4 * Hp), lambda i: (0, 0)),
                pl.BlockSpec((1, 4 * Hp), lambda i: (0, 0)),
            ],
            out_specs=pl.BlockSpec((ts, H), lambda i: (i, 0)),
            scratch_shapes=[
                pltpu.VMEM((ts, 4 * Hp), jnp.float32),   # pre-activations (tile)
                pltpu.VMEM((1, H), jnp.float32),         # h carry across tiles
                pltpu.VMEM((1, H), jnp.float32),         # c carry across tiles
            ],
        ),
        compiler_params=pltpu.CompilerParams(
            dimension_semantics=("arbitrary",)),   # serial carry across S tiles
    )(z, wih_p, whh_p, b_p)

    # TODO(synk): nn.Dropout(0.5) is identity in eval/inference mode; the
    # stochastic training-mode mask is omitted here.

    # ---- kernel B: fused heads + softmax, lane-dense (S, OUTP) output ----
    heads_kernel = functools.partial(_heads_kernel, segments=segments)
    out_all = pl.pallas_call(
        heads_kernel,
        out_shape=jax.ShapeDtypeStruct((S, OUTP), jnp.float32),
        grid_spec=pltpu.PrefetchScalarGridSpec(
            num_scalar_prefetch=0,
            grid=(n_tiles,),
            in_specs=[
                pl.BlockSpec((ts, H), lambda i: (i, 0)),
                pl.BlockSpec((H, OUTP), lambda i: (0, 0)),
                pl.BlockSpec((1, OUTP), lambda i: (0, 0)),
            ],
            out_specs=pl.BlockSpec((ts, OUTP), lambda i: (i, 0)),
        ),
        compiler_params=pltpu.CompilerParams(
            dimension_semantics=("parallel",)),    # independent over S tiles
    )(hs, w_all, b_all)

    # split the lane-dense slab into the five heads; re-add batch dim of 1
    return tuple(out_all[:, lo:hi][None] for lo, hi in segments)


# --------------------------------------------------------------------------
# Parameter init (PyTorch LSTM/Linear layouts, stored pre-transposed)
# --------------------------------------------------------------------------
def init_params(key, rep_size, hidden_size, time_size, node_label_size,
                edge_label_size):
    ks = jax.random.split(key, 14)
    s = 1.0 / jnp.sqrt(hidden_size)

    def u(k, shape):
        return jax.random.uniform(k, shape, jnp.float32, -s, s)

    return {
        # LSTM (PyTorch layout W_ih:(4H,R), W_hh:(4H,H)) stored transposed
        "w_ih_t": u(ks[0], (rep_size, 4 * hidden_size)),
        "w_hh_t": u(ks[1], (hidden_size, 4 * hidden_size)),
        "b_lstm": u(ks[2], (1, 4 * hidden_size)) + u(ks[3], (1, 4 * hidden_size)),
        # heads (stored as (H, out) = W^T)
        "w_tu": u(ks[4], (hidden_size, time_size)),
        "b_tu": u(ks[5], (1, time_size)),
        "w_tv": u(ks[6], (hidden_size, time_size)),
        "b_tv": u(ks[7], (1, time_size)),
        "w_lu": u(ks[8], (hidden_size, node_label_size)),
        "b_lu": u(ks[9], (1, node_label_size)),
        "w_lv": u(ks[10], (hidden_size, node_label_size)),
        "b_lv": u(ks[11], (1, node_label_size)),
        "w_le": u(ks[12], (hidden_size, edge_label_size)),
        "b_le": u(ks[13], (1, edge_label_size)),
    }


def _reference(z, p):
    """Pure-JAX reference of the same forward (eval mode, dropout = id)."""
    S, _ = z.shape
    H = p["w_hh_t"].shape[0]
    pre = z @ p["w_ih_t"] + p["b_lstm"]
    h = jnp.zeros((1, H), jnp.float32)
    c = jnp.zeros((1, H), jnp.float32)
    hs = []
    for t in range(S):
        gates = pre[t:t + 1] + h @ p["w_hh_t"]
        i = jax.nn.sigmoid(gates[:, 0 * H:1 * H])
        f = jax.nn.sigmoid(gates[:, 1 * H:2 * H])
        g = jnp.tanh(gates[:, 2 * H:3 * H])
        o = jax.nn.sigmoid(gates[:, 3 * H:4 * H])
        c = f * c + i * g
        h = o * jnp.tanh(c)
        hs.append(h)
    hs = jnp.concatenate(hs, axis=0)

    def head(w, b):
        return jax.nn.softmax(hs @ w + b, axis=-1)[None]

    return (head(p["w_tu"], p["b_tu"]), head(p["w_tv"], p["b_tv"]),
            head(p["w_lu"], p["b_lu"]), head(p["w_lv"], p["b_lv"]),
            head(p["w_le"], p["b_le"]))


if __name__ == "__main__":
    # small shapes consistent with the module
    SEQ, REP, HID = 8, 16, 32
    TIME, NODE_LBL, EDGE_LBL = 8, 8, 4

    key = jax.random.PRNGKey(0)
    kz, kp = jax.random.split(key)
    z = jax.random.normal(kz, (SEQ, REP), jnp.float32)
    params = init_params(kp, REP, HID, TIME, NODE_LBL, EDGE_LBL)

    outs = gcn_decoder_forward(z, params)
    outs = jax.block_until_ready(outs)

    refs = _reference(z, params)
    for o, r in zip(outs, refs):
        assert o.shape == r.shape
        assert jnp.allclose(o, r, atol=1e-5, rtol=1e-5), "mismatch vs reference"
        assert jnp.allclose(jnp.sum(o, axis=-1), 1.0, atol=1e-5)

    print("KERNEL_OK")
</pallas_src>

<mosaic_0001>
module attributes {stable_mosaic.version = 11 : i64} {
  func.func @_lstm_kernel(%arg0: i32, %arg1: memref<8x16xf32, #tpu.memory_space<vmem>>, %arg2: memref<16x512xf32, #tpu.memory_space<vmem>>, %arg3: memref<32x512xf32, #tpu.memory_space<vmem>>, %arg4: memref<1x512xf32, #tpu.memory_space<vmem>>, %arg5: memref<8x32xf32, #tpu.memory_space<vmem>>, %arg6: memref<8x512xf32, #tpu.memory_space<vmem>>, %arg7: memref<1x32xf32, #tpu.memory_space<vmem>>, %arg8: memref<1x32xf32, #tpu.memory_space<vmem>>) attributes {dimension_semantics = [#tpu.dimension_semantics<arbitrary>], iteration_bounds = array<i64: 1>, scalar_prefetch = 0 : i64, scratch_operands = 3 : i64, tpu.core_type = #tpu.core_type<tc>, window_params = [{transform_indices = @transform_0, window_bounds = array<i64: 8, 16>}, {pipeline_mode = #tpu.pipeline_mode<synchronous>, transform_indices = @transform_1, window_bounds = array<i64: 16, 512>}, {pipeline_mode = #tpu.pipeline_mode<synchronous>, transform_indices = @transform_2, window_bounds = array<i64: 32, 512>}, {pipeline_mode = #tpu.pipeline_mode<synchronous>, transform_indices = @transform_3, window_bounds = array<i64: 1, 512>}, {transform_indices = @transform_4, window_bounds = array<i64: 8, 32>}]} {
    %c0_i32 = arith.constant 0 : i32
    %0 = arith.cmpi eq, %arg0, %c0_i32 : i32
    %1 = arith.extui %0 : i1 to i32
    %c0_i32_0 = arith.constant 0 : i32
    %2 = arith.cmpi ne, %1, %c0_i32_0 : i32
    scf.if %2 {
      %cst_81 = arith.constant 0.000000e+00 : f32
      %270 = vector.broadcast %cst_81 : f32 to vector<1x32xf32>
      %c0_82 = arith.constant 0 : index
      %c0_83 = arith.constant 0 : index
      %271 = vector.load %arg7[%c0_82, %c0_83] : memref<1x32xf32, #tpu.memory_space<vmem>>, vector<1x32xf32>
      tpu.vector_store %arg7[%c0_82, %c0_83], %270 {strides = array<i32>} : memref<1x32xf32, #tpu.memory_space<vmem>>, vector<1x32xf32>,
      %cst_84 = arith.constant 0.000000e+00 : f32
      %272 = vector.broadcast %cst_84 : f32 to vector<1x32xf32>
      %c0_85 = arith.constant 0 : index
      %c0_86 = arith.constant 0 : index
      %273 = vector.load %arg8[%c0_85, %c0_86] : memref<1x32xf32, #tpu.memory_space<vmem>>, vector<1x32xf32>
      tpu.vector_store %arg8[%c0_85, %c0_86], %272 {strides = array<i32>} : memref<1x32xf32, #tpu.memory_space<vmem>>, vector<1x32xf32>,
    } else {
    }
    %c0 = arith.constant 0 : index
    %c0_1 = arith.constant 0 : index
    %3 = vector.load %arg1[%c0, %c0_1] : memref<8x16xf32, #tpu.memory_space<vmem>>, vector<8x16xf32>
    %c0_2 = arith.constant 0 : index
    %c0_3 = arith.constant 0 : index
    %4 = vector.load %arg2[%c0_2, %c0_3] : memref<16x512xf32, #tpu.memory_space<vmem>>, vector<16x512xf32>
    %cst = arith.constant dense<0.000000e+00> : vector<8x512xf32>
    %5 = tpu.matmul %3, %4, %cst {dimension_numbers = #tpu.dot_dimension_numbers<[1], [0], [0], [1], [0, 0, 1, 1], [], []>} : vector<8x16xf32>, vector<16x512xf32>, vector<8x512xf32> -> vector<8x512xf32>
    %c0_4 = arith.constant 0 : index
    %c0_5 = arith.constant 0 : index
    %6 = vector.load %arg4[%c0_4, %c0_5] : memref<1x512xf32, #tpu.memory_space<vmem>>, vector<1x512xf32>
    %7 = vector.broadcast %6 : vector<1x512xf32> to vector<8x512xf32>
    %8 = arith.addf %5, %7 : vector<8x512xf32>
    %c0_6 = arith.constant 0 : index
    %c0_7 = arith.constant 0 : index
    %9 = vector.load %arg6[%c0_6, %c0_7] : memref<8x512xf32, #tpu.memory_space<vmem>>, vector<8x512xf32>
    tpu.vector_store %arg6[%c0_6, %c0_7], %8 {strides = array<i32>} : memref<8x512xf32, #tpu.memory_space<vmem>>, vector<8x512xf32>,
    %c0_8 = arith.constant 0 : index
    %c0_9 = arith.constant 0 : index
    %10 = vector.load %arg7[%c0_8, %c0_9] : memref<1x32xf32, #tpu.memory_space<vmem>>, vector<1x32xf32>
    %c0_10 = arith.constant 0 : index
    %c0_11 = arith.constant 0 : index
    %11 = vector.load %arg8[%c0_10, %c0_11] : memref<1x32xf32, #tpu.memory_space<vmem>>, vector<1x32xf32>
    %c0_i32_12 = arith.constant 0 : i32
    %12 = arith.index_cast %c0_i32_12 : i32 to index
    %c0_13 = arith.constant 0 : index
    %13 = vector.load %arg6[%12, %c0_13] : memref<8x512xf32, #tpu.memory_space<vmem>>, vector<1x512xf32>
    %c0_14 = arith.constant 0 : index
    %c0_15 = arith.constant 0 : index
    %14 = vector.load %arg3[%c0_14, %c0_15] : memref<32x512xf32, #tpu.memory_space<vmem>>, vector<32x512xf32>
    %cst_16 = arith.constant dense<0.000000e+00> : vector<1x512xf32>
    %15 = tpu.matmul %10, %14, %cst_16 {dimension_numbers = #tpu.dot_dimension_numbers<[1], [0], [0], [1], [0, 0, 1, 1], [], []>} : vector<1x32xf32>, vector<32x512xf32>, vector<1x512xf32> -> vector<1x512xf32>
    %16 = arith.addf %13, %15 : vector<1x512xf32>
    %17 = vector.extract_strided_slice %16 {offsets = [0, 0], sizes = [1, 32], strides = [1, 1]} : vector<1x512xf32> to vector<1x32xf32>
    %18 = arith.negf %17 : vector<1x32xf32>
    %19 = math.exp %18 : vector<1x32xf32>
    %cst_17 = arith.constant 1.000000e+00 : f32
    %20 = vector.broadcast %cst_17 : f32 to vector<1x32xf32>
    %21 = arith.addf %20, %19 : vector<1x32xf32>
    %22 = arith.divf %20, %21 : vector<1x32xf32>
    %23 = vector.extract_strided_slice %16 {offsets = [0, 128], sizes = [1, 32], strides = [1, 1]} : vector<1x512xf32> to vector<1x32xf32>
    %24 = arith.negf %23 : vector<1x32xf32>
    %25 = math.exp %24 : vector<1x32xf32>
    %cst_18 = arith.constant 1.000000e+00 : f32
    %26 = vector.broadcast %cst_18 : f32 to vector<1x32xf32>
    %27 = arith.addf %26, %25 : vector<1x32xf32>
    %28 = arith.divf %26, %27 : vector<1x32xf32>
    %29 = vector.extract_strided_slice %16 {offsets = [0, 256], sizes = [1, 32], strides = [1, 1]} : vector<1x512xf32> to vector<1x32xf32>
    %30 = math.tanh %29 : vector<1x32xf32>
    %31 = vector.extract_strided_slice %16 {offsets = [0, 384], sizes = [1, 32], strides = [1, 1]} : vector<1x512xf32> to vector<1x32xf32>
    %32 = arith.negf %31 : vector<1x32xf32>
    %33 = math.exp %32 : vector<1x32xf32>
    %cst_19 = arith.constant 1.000000e+00 : f32
    %34 = vector.broadcast %cst_19 : f32 to vector<1x32xf32>
    %35 = arith.addf %34, %33 : vector<1x32xf32>
    %36 = arith.divf %34, %35 : vector<1x32xf32>
    %37 = arith.mulf %28, %11 : vector<1x32xf32>
    %38 = arith.mulf %22, %30 : vector<1x32xf32>
    %39 = arith.addf %37, %38 : vector<1x32xf32>
    %40 = math.tanh %39 : vector<1x32xf32>
    %41 = arith.mulf %36, %40 : vector<1x32xf32>
    %42 = arith.index_cast %c0_i32_12 : i32 to index
    %c0_20 = arith.constant 0 : index
    %43 = vector.load %arg5[%42, %c0_20] : memref<8x32xf32, #tpu.memory_space<vmem>>, vector<1x32xf32>
    tpu.vector_store %arg5[%42, %c0_20], %41 {strides = array<i32>} : memref<8x32xf32, #tpu.memory_space<vmem>>, vector<1x32xf32>,
    %c1_i32 = arith.constant 1 : i32
    %44 = arith.index_cast %c1_i32 : i32 to index
    %c0_21 = arith.constant 0 : index
    %45 = vector.load %arg6[%44, %c0_21] : memref<8x512xf32, #tpu.memory_space<vmem>>, vector<1x512xf32>
    %c0_22 = arith.constant 0 : index
    %c0_23 = arith.constant 0 : index
    %46 = vector.load %arg3[%c0_22, %c0_23] : memref<32x512xf32, #tpu.memory_space<vmem>>, vector<32x512xf32>
    %cst_24 = arith.constant dense<0.000000e+00> : vector<1x512xf32>
    %47 = tpu.matmul %41, %46, %cst_24 {dimension_numbers = #tpu.dot_dimension_numbers<[1], [0], [0], [1], [0, 0, 1, 1], [], []>} : vector<1x32xf32>, vector<32x512xf32>, vector<1x512xf32> -> vector<1x512xf32>
    %48 = arith.addf %45, %47 : vector<1x512xf32>
    %49 = vector.extract_strided_slice %48 {offsets = [0, 0], sizes = [1, 32], strides = [1, 1]} : vector<1x512xf32> to vector<1x32xf32>
    %50 = arith.negf %49 : vector<1x32xf32>
    %51 = math.exp %50 : vector<1x32xf32>
    %cst_25 = arith.constant 1.000000e+00 : f32
    %52 = vector.broadcast %cst_25 : f32 to vector<1x32xf32>
    %53 = arith.addf %52, %51 : vector<1x32xf32>
    %54 = arith.divf %52, %53 : vector<1x32xf32>
    %55 = vector.extract_strided_slice %48 {offsets = [0, 128], sizes = [1, 32], strides = [1, 1]} : vector<1x512xf32> to vector<1x32xf32>
    %56 = arith.negf %55 : vector<1x32xf32>
    %57 = math.exp %56 : vector<1x32xf32>
    %cst_26 = arith.constant 1.000000e+00 : f32
    %58 = vector.broadcast %cst_26 : f32 to vector<1x32xf32>
    %59 = arith.addf %58, %57 : vector<1x32xf32>
    %60 = arith.divf %58, %59 : vector<1x32xf32>
    %61 = vector.extract_strided_slice %48 {offsets = [0, 256], sizes = [1, 32], strides = [1, 1]} : vector<1x512xf32> to vector<1x32xf32>
    %62 = math.tanh %61 : vector<1x32xf32>
    %63 = vector.extract_strided_slice %48 {offsets = [0, 384], sizes = [1, 32], strides = [1, 1]} : vector<1x512xf32> to vector<1x32xf32>
    %64 = arith.negf %63 : vector<1x32xf32>
    %65 = math.exp %64 : vector<1x32xf32>
    %cst_27 = arith.constant 1.000000e+00 : f32
    %66 = vector.broadcast %cst_27 : f32 to vector<1x32xf32>
    %67 = arith.addf %66, %65 : vector<1x32xf32>
    %68 = arith.divf %66, %67 : vector<1x32xf32>
    %69 = arith.mulf %60, %39 : vector<1x32xf32>
    %70 = arith.mulf %54, %62 : vector<1x32xf32>
    %71 = arith.addf %69, %70 : vector<1x32xf32>
    %72 = math.tanh %71 : vector<1x32xf32>
    %73 = arith.mulf %68, %72 : vector<1x32xf32>
    %74 = arith.index_cast %c1_i32 : i32 to index
    %c0_28 = arith.constant 0 : index
    %75 = vector.load %arg5[%74, %c0_28] : memref<8x32xf32, #tpu.memory_space<vmem>>, vector<1x32xf32>
    tpu.vector_store %arg5[%74, %c0_28], %73 {strides = array<i32>} : memref<8x32xf32, #tpu.memory_space<vmem>>, vector<1x32xf32>,
    %c2_i32 = arith.constant 2 : i32
    %76 = arith.index_cast %c2_i32 : i32 to index
    %c0_29 = arith.constant 0 : index
    %77 = vector.load %arg6[%76, %c0_29] : memref<8x512xf32, #tpu.memory_space<vmem>>, vector<1x512xf32>
    %c0_30 = arith.constant 0 : index
    %c0_31 = arith.constant 0 : index
    %78 = vector.load %arg3[%c0_30, %c0_31] : memref<32x512xf32, #tpu.memory_space<vmem>>, vector<32x512xf32>
    %cst_32 = arith.constant dense<0.000000e+00> : vector<1x512xf32>
    %79 = tpu.matmul %73, %78, %cst_32 {dimension_numbers = #tpu.dot_dimension_numbers<[1], [0], [0], [1], [0, 0, 1, 1], [], []>} : vector<1x32xf32>, vector<32x512xf32>, vector<1x512xf32> -> vector<1x512xf32>
    %80 = arith.addf %77, %79 : vector<1x512xf32>
    %81 = vector.extract_strided_slice %80 {offsets = [0, 0], sizes = [1, 32], strides = [1, 1]} : vector<1x512xf32> to vector<1x32xf32>
    %82 = arith.negf %81 : vector<1x32xf32>
    %83 = math.exp %82 : vector<1x32xf32>
    %cst_33 = arith.constant 1.000000e+00 : f32
    %84 = vector.broadcast %cst_33 : f32 to vector<1x32xf32>
    %85 = arith.addf %84, %83 : vector<1x32xf32>
    %86 = arith.divf %84, %85 : vector<1x32xf32>
    %87 = vector.extract_strided_slice %80 {offsets = [0, 128], sizes = [1, 32], strides = [1, 1]} : vector<1x512xf32> to vector<1x32xf32>
    %88 = arith.negf %87 : vector<1x32xf32>
    %89 = math.exp %88 : vector<1x32xf32>
    %cst_34 = arith.constant 1.000000e+00 : f32
    %90 = vector.broadcast %cst_34 : f32 to vector<1x32xf32>
    %91 = arith.addf %90, %89 : vector<1x32xf32>
    %92 = arith.divf %90, %91 : vector<1x32xf32>
    %93 = vector.extract_strided_slice %80 {offsets = [0, 256], sizes = [1, 32], strides = [1, 1]} : vector<1x512xf32> to vector<1x32xf32>
    %94 = math.tanh %93 : vector<1x32xf32>
    %95 = vector.extract_strided_slice %80 {offsets = [0, 384], sizes = [1, 32], strides = [1, 1]} : vector<1x512xf32> to vector<1x32xf32>
    %96 = arith.negf %95 : vector<1x32xf32>
    %97 = math.exp %96 : vector<1x32xf32>
    %cst_35 = arith.constant 1.000000e+00 : f32
    %98 = vector.broadcast %cst_35 : f32 to vector<1x32xf32>
    %99 = arith.addf %98, %97 : vector<1x32xf32>
    %100 = arith.divf %98, %99 : vector<1x32xf32>
    %101 = arith.mulf %92, %71 : vector<1x32xf32>
    %102 = arith.mulf %86, %94 : vector<1x32xf32>
    %103 = arith.addf %101, %102 : vector<1x32xf32>
    %104 = math.tanh %103 : vector<1x32xf32>
    %105 = arith.mulf %100, %104 : vector<1x32xf32>
    %106 = arith.index_cast %c2_i32 : i32 to index
    %c0_36 = arith.constant 0 : index
    %107 = vector.load %arg5[%106, %c0_36] : memref<8x32xf32, #tpu.memory_space<vmem>>, vector<1x32xf32>
    tpu.vector_store %arg5[%106, %c0_36], %105 {strides = array<i32>} : memref<8x32xf32, #tpu.memory_space<vmem>>, vector<1x32xf32>,
    %c3_i32 = arith.constant 3 : i32
    %108 = arith.index_cast %c3_i32 : i32 to index
    %c0_37 = arith.constant 0 : index
    %109 = vector.load %arg6[%108, %c0_37] : memref<8x512xf32, #tpu.memory_space<vmem>>, vector<1x512xf32>
    %c0_38 = arith.constant 0 : index
    %c0_39 = arith.constant 0 : index
    %110 = vector.load %arg3[%c0_38, %c0_39] : memref<32x512xf32, #tpu.memory_space<vmem>>, vector<32x512xf32>
    %cst_40 = arith.constant dense<0.000000e+00> : vector<1x512xf32>
    %111 = tpu.matmul %105, %110, %cst_40 {dimension_numbers = #tpu.dot_dimension_numbers<[1], [0], [0], [1], [0, 0, 1, 1], [], []>} : vector<1x32xf32>, vector<32x512xf32>, vector<1x512xf32> -> vector<1x512xf32>
    %112 = arith.addf %109, %111 : vector<1x512xf32>
    %113 = vector.extract_strided_slice %112 {offsets = [0, 0], sizes = [1, 32], strides = [1, 1]} : vector<1x512xf32> to vector<1x32xf32>
    %114 = arith.negf %113 : vector<1x32xf32>
    %115 = math.exp %114 : vector<1x32xf32>
    %cst_41 = arith.constant 1.000000e+00 : f32
    %116 = vector.broadcast %cst_41 : f32 to vector<1x32xf32>
    %117 = arith.addf %116, %115 : vector<1x32xf32>
    %118 = arith.divf %116, %117 : vector<1x32xf32>
    %119 = vector.extract_strided_slice %112 {offsets = [0, 128], sizes = [1, 32], strides = [1, 1]} : vector<1x512xf32> to vector<1x32xf32>
    %120 = arith.negf %119 : vector<1x32xf32>
    %121 = math.exp %120 : vector<1x32xf32>
    %cst_42 = arith.constant 1.000000e+00 : f32
    %122 = vector.broadcast %cst_42 : f32 to vector<1x32xf32>
    %123 = arith.addf %122, %121 : vector<1x32xf32>
    %124 = arith.divf %122, %123 : vector<1x32xf32>
    %125 = vector.extract_strided_slice %112 {offsets = [0, 256], sizes = [1, 32], strides = [1, 1]} : vector<1x512xf32> to vector<1x32xf32>
    %126 = math.tanh %125 : vector<1x32xf32>
    %127 = vector.extract_strided_slice %112 {offsets = [0, 384], sizes = [1, 32], strides = [1, 1]} : vector<1x512xf32> to vector<1x32xf32>
    %128 = arith.negf %127 : vector<1x32xf32>
    %129 = math.exp %128 : vector<1x32xf32>
    %cst_43 = arith.constant 1.000000e+00 : f32
    %130 = vector.broadcast %cst_43 : f32 to vector<1x32xf32>
    %131 = arith.addf %130, %129 : vector<1x32xf32>
    %132 = arith.divf %130, %131 : vector<1x32xf32>
    %133 = arith.mulf %124, %103 : vector<1x32xf32>
    %134 = arith.mulf %118, %126 : vector<1x32xf32>
    %135 = arith.addf %133, %134 : vector<1x32xf32>
    %136 = math.tanh %135 : vector<1x32xf32>
    %137 = arith.mulf %132, %136 : vector<1x32xf32>
    %138 = arith.index_cast %c3_i32 : i32 to index
    %c0_44 = arith.constant 0 : index
    %139 = vector.load %arg5[%138, %c0_44] : memref<8x32xf32, #tpu.memory_space<vmem>>, vector<1x32xf32>
    tpu.vector_store %arg5[%138, %c0_44], %137 {strides = array<i32>} : memref<8x32xf32, #tpu.memory_space<vmem>>, vector<1x32xf32>,
    %c4_i32 = arith.constant 4 : i32
    %140 = arith.index_cast %c4_i32 : i32 to index
    %c0_45 = arith.constant 0 : index
    %141 = vector.load %arg6[%140, %c0_45] : memref<8x512xf32, #tpu.memory_space<vmem>>, vector<1x512xf32>
    %c0_46 = arith.constant 0 : index
    %c0_47 = arith.constant 0 : index
    %142 = vector.load %arg3[%c0_46, %c0_47] : memref<32x512xf32, #tpu.memory_space<vmem>>, vector<32x512xf32>
    %cst_48 = arith.constant dense<0.000000e+00> : vector<1x512xf32>
    %143 = tpu.matmul %137, %142, %cst_48 {dimension_numbers = #tpu.dot_dimension_numbers<[1], [0], [0], [1], [0, 0, 1, 1], [], []>} : vector<1x32xf32>, vector<32x512xf32>, vector<1x512xf32> -> vector<1x512xf32>
    %144 = arith.addf %141, %143 : vector<1x512xf32>
    %145 = vector.extract_strided_slice %144 {offsets = [0, 0], sizes = [1, 32], strides = [1, 1]} : vector<1x512xf32> to vector<1x32xf32>
    %146 = arith.negf %145 : vector<1x32xf32>
    %147 = math.exp %146 : vector<1x32xf32>
    %cst_49 = arith.constant 1.000000e+00 : f32
    %148 = vector.broadcast %cst_49 : f32 to vector<1x32xf32>
    %149 = arith.addf %148, %147 : vector<1x32xf32>
    %150 = arith.divf %148, %149 : vector<1x32xf32>
    %151 = vector.extract_strided_slice %144 {offsets = [0, 128], sizes = [1, 32], strides = [1, 1]} : vector<1x512xf32> to vector<1x32xf32>
    %152 = arith.negf %151 : vector<1x32xf32>
    %153 = math.exp %152 : vector<1x32xf32>
    %cst_50 = arith.constant 1.000000e+00 : f32
    %154 = vector.broadcast %cst_50 : f32 to vector<1x32xf32>
    %155 = arith.addf %154, %153 : vector<1x32xf32>
    %156 = arith.divf %154, %155 : vector<1x32xf32>
    %157 = vector.extract_strided_slice %144 {offsets = [0, 256], sizes = [1, 32], strides = [1, 1]} : vector<1x512xf32> to vector<1x32xf32>
    %158 = math.tanh %157 : vector<1x32xf32>
    %159 = vector.extract_strided_slice %144 {offsets = [0, 384], sizes = [1, 32], strides = [1, 1]} : vector<1x512xf32> to vector<1x32xf32>
    %160 = arith.negf %159 : vector<1x32xf32>
    %161 = math.exp %160 : vector<1x32xf32>
    %cst_51 = arith.constant 1.000000e+00 : f32
    %162 = vector.broadcast %cst_51 : f32 to vector<1x32xf32>
    %163 = arith.addf %162, %161 : vector<1x32xf32>
    %164 = arith.divf %162, %163 : vector<1x32xf32>
    %165 = arith.mulf %156, %135 : vector<1x32xf32>
    %166 = arith.mulf %150, %158 : vector<1x32xf32>
    %167 = arith.addf %165, %166 : vector<1x32xf32>
    %168 = math.tanh %167 : vector<1x32xf32>
    %169 = arith.mulf %164, %168 : vector<1x32xf32>
    %170 = arith.index_cast %c4_i32 : i32 to index
    %c0_52 = arith.constant 0 : index
    %171 = vector.load %arg5[%170, %c0_52] : memref<8x32xf32, #tpu.memory_space<vmem>>, vector<1x32xf32>
    tpu.vector_store %arg5[%170, %c0_52], %169 {strides = array<i32>} : memref<8x32xf32, #tpu.memory_space<vmem>>, vector<1x32xf32>,
    %c5_i32 = arith.constant 5 : i32
    %172 = arith.index_cast %c5_i32 : i32 to index
    %c0_53 = arith.constant 0 : index
    %173 = vector.load %arg6[%172, %c0_53] : memref<8x512xf32, #tpu.memory_space<vmem>>, vector<1x512xf32>
    %c0_54 = arith.constant 0 : index
    %c0_55 = arith.constant 0 : index
    %174 = vector.load %arg3[%c0_54, %c0_55] : memref<32x512xf32, #tpu.memory_space<vmem>>, vector<32x512xf32>
    %cst_56 = arith.constant dense<0.000000e+00> : vector<1x512xf32>
    %175 = tpu.matmul %169, %174, %cst_56 {dimension_numbers = #tpu.dot_dimension_numbers<[1], [0], [0], [1], [0, 0, 1, 1], [], []>} : vector<1x32xf32>, vector<32x512xf32>, vector<1x512xf32> -> vector<1x512xf32>
    %176 = arith.addf %173, %175 : vector<1x512xf32>
    %177 = vector.extract_strided_slice %176 {offsets = [0, 0], sizes = [1, 32], strides = [1, 1]} : vector<1x512xf32> to vector<1x32xf32>
    %178 = arith.negf %177 : vector<1x32xf32>
    %179 = math.exp %178 : vector<1x32xf32>
    %cst_57 = arith.constant 1.000000e+00 : f32
    %180 = vector.broadcast %cst_57 : f32 to vector<1x32xf32>
    %181 = arith.addf %180, %179 : vector<1x32xf32>
    %182 = arith.divf %180, %181 : vector<1x32xf32>
    %183 = vector.extract_strided_slice %176 {offsets = [0, 128], sizes = [1, 32], strides = [1, 1]} : vector<1x512xf32> to vector<1x32xf32>
    %184 = arith.negf %183 : vector<1x32xf32>
    %185 = math.exp %184 : vector<1x32xf32>
    %cst_58 = arith.constant 1.000000e+00 : f32
    %186 = vector.broadcast %cst_58 : f32 to vector<1x32xf32>
    %187 = arith.addf %186, %185 : vector<1x32xf32>
    %188 = arith.divf %186, %187 : vector<1x32xf32>
    %189 = vector.extract_strided_slice %176 {offsets = [0, 256], sizes = [1, 32], strides = [1, 1]} : vector<1x512xf32> to vector<1x32xf32>
    %190 = math.tanh %189 : vector<1x32xf32>
    %191 = vector.extract_strided_slice %176 {offsets = [0, 384], sizes = [1, 32], strides = [1, 1]} : vector<1x512xf32> to vector<1x32xf32>
    %192 = arith.negf %191 : vector<1x32xf32>
    %193 = math.exp %192 : vector<1x32xf32>
    %cst_59 = arith.constant 1.000000e+00 : f32
    %194 = vector.broadcast %cst_59 : f32 to vector<1x32xf32>
    %195 = arith.addf %194, %193 : vector<1x32xf32>
    %196 = arith.divf %194, %195 : vector<1x32xf32>
    %197 = arith.mulf %188, %167 : vector<1x32xf32>
    %198 = arith.mulf %182, %190 : vector<1x32xf32>
    %199 = arith.addf %197, %198 : vector<1x32xf32>
    %200 = math.tanh %199 : vector<1x32xf32>
    %201 = arith.mulf %196, %200 : vector<1x32xf32>
    %202 = arith.index_cast %c5_i32 : i32 to index
    %c0_60 = arith.constant 0 : index
    %203 = vector.load %arg5[%202, %c0_60] : memref<8x32xf32, #tpu.memory_space<vmem>>, vector<1x32xf32>
    tpu.vector_store %arg5[%202, %c0_60], %201 {strides = array<i32>} : memref<8x32xf32, #tpu.memory_space<vmem>>, vector<1x32xf32>,
    %c6_i32 = arith.constant 6 : i32
    %204 = arith.index_cast %c6_i32 : i32 to index
    %c0_61 = arith.constant 0 : index
    %205 = vector.load %arg6[%204, %c0_61] : memref<8x512xf32, #tpu.memory_space<vmem>>, vector<1x512xf32>
    %c0_62 = arith.constant 0 : index
    %c0_63 = arith.constant 0 : index
    %206 = vector.load %arg3[%c0_62, %c0_63] : memref<32x512xf32, #tpu.memory_space<vmem>>, vector<32x512xf32>
    %cst_64 = arith.constant dense<0.000000e+00> : vector<1x512xf32>
    %207 = tpu.matmul %201, %206, %cst_64 {dimension_numbers = #tpu.dot_dimension_numbers<[1], [0], [0], [1], [0, 0, 1, 1], [], []>} : vector<1x32xf32>, vector<32x512xf32>, vector<1x512xf32> -> vector<1x512xf32>
    %208 = arith.addf %205, %207 : vector<1x512xf32>
    %209 = vector.extract_strided_slice %208 {offsets = [0, 0], sizes = [1, 32], strides = [1, 1]} : vector<1x512xf32> to vector<1x32xf32>
    %210 = arith.negf %209 : vector<1x32xf32>
    %211 = math.exp %210 : vector<1x32xf32>
    %cst_65 = arith.constant 1.000000e+00 : f32
    %212 = vector.broadcast %cst_65 : f32 to vector<1x32xf32>
    %213 = arith.addf %212, %211 : vector<1x32xf32>
    %214 = arith.divf %212, %213 : vector<1x32xf32>
    %215 = vector.extract_strided_slice %208 {offsets = [0, 128], sizes = [1, 32], strides = [1, 1]} : vector<1x512xf32> to vector<1x32xf32>
    %216 = arith.negf %215 : vector<1x32xf32>
    %217 = math.exp %216 : vector<1x32xf32>
    %cst_66 = arith.constant 1.000000e+00 : f32
    %218 = vector.broadcast %cst_66 : f32 to vector<1x32xf32>
    %219 = arith.addf %218, %217 : vector<1x32xf32>
    %220 = arith.divf %218, %219 : vector<1x32xf32>
    %221 = vector.extract_strided_slice %208 {offsets = [0, 256], sizes = [1, 32], strides = [1, 1]} : vector<1x512xf32> to vector<1x32xf32>
    %222 = math.tanh %221 : vector<1x32xf32>
    %223 = vector.extract_strided_slice %208 {offsets = [0, 384], sizes = [1, 32], strides = [1, 1]} : vector<1x512xf32> to vector<1x32xf32>
    %224 = arith.negf %223 : vector<1x32xf32>
    %225 = math.exp %224 : vector<1x32xf32>
    %cst_67 = arith.constant 1.000000e+00 : f32
    %226 = vector.broadcast %cst_67 : f32 to vector<1x32xf32>
    %227 = arith.addf %226, %225 : vector<1x32xf32>
    %228 = arith.divf %226, %227 : vector<1x32xf32>
    %229 = arith.mulf %220, %199 : vector<1x32xf32>
    %230 = arith.mulf %214, %222 : vector<1x32xf32>
    %231 = arith.addf %229, %230 : vector<1x32xf32>
    %232 = math.tanh %231 : vector<1x32xf32>
    %233 = arith.mulf %228, %232 : vector<1x32xf32>
    %234 = arith.index_cast %c6_i32 : i32 to index
    %c0_68 = arith.constant 0 : index
    %235 = vector.load %arg5[%234, %c0_68] : memref<8x32xf32, #tpu.memory_space<vmem>>, vector<1x32xf32>
    tpu.vector_store %arg5[%234, %c0_68], %233 {strides = array<i32>} : memref<8x32xf32, #tpu.memory_space<vmem>>, vector<1x32xf32>,
    %c7_i32 = arith.constant 7 : i32
    %236 = arith.index_cast %c7_i32 : i32 to index
    %c0_69 = arith.constant 0 : index
    %237 = vector.load %arg6[%236, %c0_69] : memref<8x512xf32, #tpu.memory_space<vmem>>, vector<1x512xf32>
    %c0_70 = arith.constant 0 : index
    %c0_71 = arith.constant 0 : index
    %238 = vector.load %arg3[%c0_70, %c0_71] : memref<32x512xf32, #tpu.memory_space<vmem>>, vector<32x512xf32>
    %cst_72 = arith.constant dense<0.000000e+00> : vector<1x512xf32>
    %239 = tpu.matmul %233, %238, %cst_72 {dimension_numbers = #tpu.dot_dimension_numbers<[1], [0], [0], [1], [0, 0, 1, 1], [], []>} : vector<1x32xf32>, vector<32x512xf32>, vector<1x512xf32> -> vector<1x512xf32>
    %240 = arith.addf %237, %239 : vector<1x512xf32>
    %241 = vector.extract_strided_slice %240 {offsets = [0, 0], sizes = [1, 32], strides = [1, 1]} : vector<1x512xf32> to vector<1x32xf32>
    %242 = arith.negf %241 : vector<1x32xf32>
    %243 = math.exp %242 : vector<1x32xf32>
    %cst_73 = arith.constant 1.000000e+00 : f32
    %244 = vector.broadcast %cst_73 : f32 to vector<1x32xf32>
    %245 = arith.addf %244, %243 : vector<1x32xf32>
    %246 = arith.divf %244, %245 : vector<1x32xf32>
    %247 = vector.extract_strided_slice %240 {offsets = [0, 128], sizes = [1, 32], strides = [1, 1]} : vector<1x512xf32> to vector<1x32xf32>
    %248 = arith.negf %247 : vector<1x32xf32>
    %249 = math.exp %248 : vector<1x32xf32>
    %cst_74 = arith.constant 1.000000e+00 : f32
    %250 = vector.broadcast %cst_74 : f32 to vector<1x32xf32>
    %251 = arith.addf %250, %249 : vector<1x32xf32>
    %252 = arith.divf %250, %251 : vector<1x32xf32>
    %253 = vector.extract_strided_slice %240 {offsets = [0, 256], sizes = [1, 32], strides = [1, 1]} : vector<1x512xf32> to vector<1x32xf32>
    %254 = math.tanh %253 : vector<1x32xf32>
    %255 = vector.extract_strided_slice %240 {offsets = [0, 384], sizes = [1, 32], strides = [1, 1]} : vector<1x512xf32> to vector<1x32xf32>
    %256 = arith.negf %255 : vector<1x32xf32>
    %257 = math.exp %256 : vector<1x32xf32>
    %cst_75 = arith.constant 1.000000e+00 : f32
    %258 = vector.broadcast %cst_75 : f32 to vector<1x32xf32>
    %259 = arith.addf %258, %257 : vector<1x32xf32>
    %260 = arith.divf %258, %259 : vector<1x32xf32>
    %261 = arith.mulf %252, %231 : vector<1x32xf32>
    %262 = arith.mulf %246, %254 : vector<1x32xf32>
    %263 = arith.addf %261, %262 : vector<1x32xf32>
    %264 = math.tanh %263 : vector<1x32xf32>
    %265 = arith.mulf %260, %264 : vector<1x32xf32>
    %266 = arith.index_cast %c7_i32 : i32 to index
    %c0_76 = arith.constant 0 : index
    %267 = vector.load %arg5[%266, %c0_76] : memref<8x32xf32, #tpu.memory_space<vmem>>, vector<1x32xf32>
    tpu.vector_store %arg5[%266, %c0_76], %265 {strides = array<i32>} : memref<8x32xf32, #tpu.memory_space<vmem>>, vector<1x32xf32>,
    %c8_i32 = arith.constant 8 : i32
    %c0_77 = arith.constant 0 : index
    %c0_78 = arith.constant 0 : index
    %268 = vector.load %arg7[%c0_77, %c0_78] : memref<1x32xf32, #tpu.memory_space<vmem>>, vector<1x32xf32>
    tpu.vector_store %arg7[%c0_77, %c0_78], %265 {strides = array<i32>} : memref<1x32xf32, #tpu.memory_space<vmem>>, vector<1x32xf32>,
    %c0_79 = arith.constant 0 : index
    %c0_80 = arith.constant 0 : index
    %269 = vector.load %arg8[%c0_79, %c0_80] : memref<1x32xf32, #tpu.memory_space<vmem>>, vector<1x32xf32>
    tpu.vector_store %arg8[%c0_79, %c0_80], %263 {strides = array<i32>} : memref<1x32xf32, #tpu.memory_space<vmem>>, vector<1x32xf32>,
    return
  }
  func.func @transform_0(%arg0: i32) -> (i32, i32) {
    %c0_i32 = arith.constant 0 : i32
    %c0_i32_0 = arith.constant 0 : i32
    return %arg0, %c0_i32 : i32, i32
  }
  func.func @transform_1(%arg0: i32) -> (i32, i32) {
    %c0_i32 = arith.constant 0 : i32
    %c0_i32_0 = arith.constant 0 : i32
    %c0_i32_1 = arith.constant 0 : i32
    return %c0_i32, %c0_i32_0 : i32, i32
  }
  func.func @transform_2(%arg0: i32) -> (i32, i32) {
    %c0_i32 = arith.constant 0 : i32
    %c0_i32_0 = arith.constant 0 : i32
    %c0_i32_1 = arith.constant 0 : i32
    return %c0_i32, %c0_i32_0 : i32, i32
  }
  func.func @transform_3(%arg0: i32) -> (i32, i32) {
    %c0_i32 = arith.constant 0 : i32
    %c0_i32_0 = arith.constant 0 : i32
    %c0_i32_1 = arith.constant 0 : i32
    return %c0_i32, %c0_i32_0 : i32, i32
  }
  func.func @transform_4(%arg0: i32) -> (i32, i32) {
    %c0_i32 = arith.constant 0 : i32
    %c0_i32_0 = arith.constant 0 : i32
    return %arg0, %c0_i32 : i32, i32
  }
}

</mosaic_0001>

<bundles_post_ra>
// kernel: tpu_custom_call.1
= control target key start
LH: loop header
LB: loop body
LE: loop exit
PB: predicated region body
PF: predicated region fallthrough
CT: control target
= control target key end

     0   :  { %9 = vsyncpa [#allocation6], 0  ;;  %s2716_s0 = inlined_call_operand.hbm [shape: f32[8,16], index: 0, kind: input, shape index: {}]   ;;  %s2717_s1 = inlined_call_operand.hbm [shape: f32[16,512], index: 1, kind: input, shape index: {}]   ;;  %s2718_s2 = inlined_call_operand.hbm [shape: f32[32,512], index: 2, kind: input, shape index: {}]   ;;  %s2719_s3 = inlined_call_operand.vmem [shape: f32[1,512], index: 3, kind: input, shape index: {}]   ;;  %s2720_s4 = inlined_call_operand.hbm [shape: f32[8,32], index: 4, kind: output, shape index: {}]  }
   0x1   :  { %10 = vsyncpa [#allocation9], 0 }
   0x2   :  { %11 = vsyncpa [#allocation7], 0  ;;  %s2474_s15 = smov [#allocation8]   ;;  %s2380_s19 = scalar_lea.hbm %s2717_s1, 1024 }
   0x3   :  { %s27_s16 = sshll.u32 %s2474_s15, 4  ;;  %p2381_p0 = scmp.ne.s32.totalorder %s2717_s1, %s2380_s19  ;;  %s28_s16 = int_to_ptr.vmem [resolvable:$true] %s27_s16 }
   0x4   :  { %p2384_p1 = scmp.lt.u32.totalorder %s2380_s19, %s2717_s1 }
   0x6   :  { %p2386_p2 = pnand %p2384_p1, %p2381_p0 }
   0x8   :  { %2389 = shalt.err (!%p2386_p2)
}
   0x9   :  { %s2390_s24 = scalar_lea.vmem %s28_s16, 1024  ;;  %p2395_p4 = scmp.lt.s32.totalorder %s28_s16, %s28_s16 }
   0xa   :  { %p2391_p3 = scmp.ne.s32.totalorder %s28_s16, %s2390_s24  ;;  %p2396_p5 = scmp.lt.s32.totalorder %s2390_s24, %s2390_s24 }
   0xc   :  { %p2397_p6 = por %p2396_p5, %p2395_p4 }
   0xe   :  { %p2398_p7 = pnand %p2397_p6, %p2391_p3 }
  0x10   :  { %2401 = shalt.err (!%p2398_p7)
}
  0x11   :  { %s2475_s25 = smov 512   ;;  %s2476_s26 = smov 32  }
  0x12   :  { %33 = dma.hbm_to_vmem [thread:$0]  %s2717_s1, 1024, %s28_s16, [#allocation9], %s2475_s25, %s2475_s25, %s2476_s26  }
  0x13   :  { %s2477_s29 = smov [#allocation5]   ;;  %s2478_s5 = smov [#allocation10]  }
  0x14   :  { %s18_s30 = sshll.u32 %s2477_s29, 4  ;;  %s39_s6 = sshll.u32 %s2478_s5, 4  ;;  %s19_s30 = int_to_ptr.vmem [resolvable:$true] %s18_s30  ;;  %s40_s6 = int_to_ptr.vmem [resolvable:$true] %s39_s6 }
  0x15   :  { %s2402_s9 = scalar_lea.hbm %s2716_s0, 128 }
  0x16   :  { %p2403_p8 = scmp.ne.s32.totalorder %s2716_s0, %s2402_s9  ;;  %p2406_p9 = scmp.lt.u32.totalorder %s2402_s9, %s2716_s0 }
  0x18   :  { %p2408_p10 = pnand %p2406_p9, %p2403_p8 }
  0x1a   :  { %2411 = shalt.err (!%p2408_p10)
}
  0x1b   :  { %s2412_s1 = scalar_lea.vmem %s19_s30, 128  ;;  %p2417_p12 = scmp.lt.s32.totalorder %s19_s30, %s19_s30 }
  0x1c   :  { %p2413_p11 = scmp.ne.s32.totalorder %s19_s30, %s2412_s1  ;;  %p2418_p13 = scmp.lt.s32.totalorder %s2412_s1, %s2412_s1 }
  0x1e   :  { %p2419_p0 = por %p2418_p13, %p2417_p12 }
  0x20   :  { %p2420_p1 = pnand %p2419_p0, %p2413_p11 }
  0x22   :  { %2423 = shalt.err (!%p2420_p1)
}
  0x23   :  { %21 = dma.hbm_to_vmem [thread:$0]  %s2716_s0, 128, %s19_s30, [#allocation6]  }
  0x24   :  { %s2424_s18 = scalar_lea.hbm %s2718_s2, 2048 }
  0x25   :  { %p2425_p2 = scmp.ne.s32.totalorder %s2718_s2, %s2424_s18  ;;  %p2428_p3 = scmp.lt.u32.totalorder %s2424_s18, %s2718_s2 }
  0x27   :  { %p2430_p4 = pnand %p2428_p3, %p2425_p2 }
  0x29   :  { %2433 = shalt.err (!%p2430_p4)
}
  0x2a   :  { %s2434_s23 = scalar_lea.vmem %s40_s6, 2048  ;;  %p2439_p6 = scmp.lt.s32.totalorder %s40_s6, %s40_s6 }
  0x2b   :  { %p2435_p5 = scmp.ne.s32.totalorder %s40_s6, %s2434_s23  ;;  %p2440_p7 = scmp.lt.s32.totalorder %s2434_s23, %s2434_s23 }
  0x2d   :  { %p2441_p8 = por %p2440_p7, %p2439_p6 }
  0x2f   :  { %p2442_p9 = pnand %p2441_p8, %p2435_p5 }
  0x31   :  { %2445 = shalt.err (!%p2442_p9)
}
  0x32   :  { %45 = dma.hbm_to_vmem [thread:$0]  %s2718_s2, 2048, %s40_s6, [#allocation9], %s2475_s25, %s2475_s25, %s2476_s26  }
  0x33   :  { %2468 = dma.done.wait [#allocation6], 128  }
  0x34   :  { %2469 = vsyncadd [#allocation6], 4294967168 }
  0x35   :  { %2470 = dma.done.wait [#allocation9], 3072  }
  0x36   :  { %2471 = vsyncadd [#allocation9], 4294964224  ;;  %vm61_vm0 = vcmask 253952   ;;  %v2479_v0 = vmov 0.0   ;;  %v66_v1 = vld [vmem:[#allocation8 + $0x8] sm:$0xff]  ;;  %v68_v3 = vld [vmem:[#allocation8 + $0x18] sm:$0xff]  ;;  %v75_v39 = vlaneseq }
  0x37   :  { %163 = vmatprep.mubr.f32.mxu0 %v2479_v0  ;;  %234 = vmatprep.mubr.f32.mxu1 %v2479_v0  ;;  %62 = vst.msk [vmem:[#allocation3] sm:$0x1] %vm61_vm0, %v2479_v0  ;;  %63 = vst.msk [vmem:[#allocation4] sm:$0x1] %vm61_vm0, %v2479_v0  ;;  %v70_v2 = vld [vmem:[#allocation8 + $0x28] sm:$0xff]  ;;  %v72_v5 = vld [vmem:[#allocation8 + $0x38] sm:$0xff] }
  0x38   :  { %v2108_v4 = vpack.c.bf16 %v70_v2, %v66_v1  ;;  %v65_v6 = vld [vmem:[#allocation8] sm:$0xff]  ;;  %v2112_v8 = vpack.c.bf16 %v72_v5, %v68_v3  ;;  %v67_v10 = vld [vmem:[#allocation8 + $0x10] sm:$0xff]  ;;  %v64_v12 = vld [vmem:[#allocation5] sm:$0xff]  ;;  %vm95_vm1 = vcmask 130048   ;;  %vm264_vm2 = vcmask 261120  }
  0x39   :  { %v69_v7 = vld [vmem:[#allocation8 + $0x20] sm:$0xff]  ;;  %v71_v11 = vld [vmem:[#allocation8 + $0x30] sm:$0xff]  ;;  %v249_v14 = vld [vmem:[#allocation10 + $0x8] sm:$0xff]  ;;  %v76_v40 = vshrl.u32 %v75_v39, 7  ;;  %v2480_v51 = vmov 1966171168  }
  0x3a   :  { %v2110_v9 = vpack.c.bf16 %v69_v7, %v65_v6  ;;  %2109 = vmatprep.subr.bf16.mxu0 %v2108_v4  ;;  %v2114_v13 = vpack.c.bf16 %v71_v11, %v67_v10  ;;  %v253_v15 = vld [vmem:[#allocation10 + $0x28] sm:$0xff]  ;;  %v251_v16 = vld [vmem:[#allocation10 + $0x18] sm:$0xff]  ;;  %2113 = vmatprep.subr.bf16.mxu1 %v2112_v8  ;;  %v248_v19 = vld [vmem:[#allocation10] sm:$0xff]  ;;  %v417_v52 = vunpack.c.l.s4 %v2480_v51 }
  0x3b   :  { %v2555_v17 = vpack.c.bf16 %v253_v15, %v249_v14  ;;  %v255_v18 = vld [vmem:[#allocation10 + $0x38] sm:$0xff]  ;;  %v252_v20 = vld [vmem:[#allocation10 + $0x20] sm:$0xff]  ;;  %v250_v23 = vld [vmem:[#allocation10 + $0x10] sm:$0xff]  ;;  %v77_v41 = vsub.s32 0, %v76_v40  ;;  %v85_v43 = vsub.s32 2, %v76_v40  ;;  %v81_v44 = vsub.s32 1, %v76_v40 }
  0x3c   :  { %2111 = vmatpush1.bf16.msra.mxu0 %v2110_v9  ;;  %2115 = vmatpush1.bf16.msra.mxu1 %v2114_v13  ;;  %v2557_v21 = vpack.c.bf16 %v255_v18, %v251_v16  ;;  %v2559_v22 = vpack.c.bf16 %v252_v20, %v248_v19  ;;  %v254_v24 = vld [vmem:[#allocation10 + $0x30] sm:$0xff]  ;;  %v257_v25 = vld [vmem:[#allocation10 + $0x48] sm:$0xff]  ;;  %v259_v28 = vld [vmem:[#allocation10 + $0x58] sm:$0xff]  ;;  %v89_v45 = vsub.s32 3, %v76_v40  ;;  %v418_v60 = vunpack.c.0.s8 %v417_v52 }
  0x3d   :  { %2117 = vmatprep.subr.bf16.mxu0 %v2555_v17  ;;  %v2562_v26 = vpack.c.bf16 %v254_v24, %v250_v23  ;;  %v261_v27 = vld [vmem:[#allocation10 + $0x68] sm:$0xff]  ;;  %v263_v29 = vld [vmem:[#allocation10 + $0x78] sm:$0xff]  ;;  %v256_v32 = vld [vmem:[#allocation10 + $0x40] sm:$0xff] }
  0x3e   :  { %2125 = vmatprep.subr.bf16.mxu1 %v2557_v21  ;;  %v2566_v30 = vpack.c.bf16 %v261_v27, %v257_v25  ;;  %v2568_v31 = vpack.c.bf16 %v263_v29, %v259_v28  ;;  %v260_v33 = vld [vmem:[#allocation10 + $0x60] sm:$0xff]  ;;  %v258_v34 = vld [vmem:[#allocation10 + $0x50] sm:$0xff]  ;;  %v2600_v61 = vsub.s32 %v418_v60, %v76_v40 }
  0x3f   :  { %2066 = vmatmul.mubr.msk.f32.vlgmr.msra.gmra.mrb[0].mxu0 %vm95_vm1, %v64_v12  ;;  %2067 = vmatmul.mubr.msk.f32.vlgmr.msra.gmra.mrb[0].mxu1 %vm95_vm1, %v64_v12  ;;  %v2572_v35 = vpack.c.bf16 %v260_v33, %v256_v32  ;;  %v262_v36 = vld [vmem:[#allocation10 + $0x70] sm:$0xff] }
  0x40   :  { %2119 = vmatpush1.bf16.msra.mxu0 %v2559_v22  ;;  %2127 = vmatpush1.bf16.msra.mxu1 %v2562_v26  ;;  %v2576_v37 = vpack.c.bf16 %v262_v36, %v258_v34  ;;  %v245_v38 = vld [vmem:[#allocation3] sm:$0x1]  ;;  %v246_v27 = vld [vmem:[#allocation4] sm:$0x1] }
  0x41   :  { %2121 = vmatprep.subr.bf16.mxu0 %v2566_v30  ;;  %2129 = vmatprep.subr.bf16.mxu1 %v2568_v31  ;;  %v73_v42 = vld [vmem:[%s2719_s3] sm:$0xf]  ;;  %s2481_s3 = smov [#allocation11]  }
  0x42   :  { %332 = vmatprep.mubr.f32.mxu0 %v2479_v0  ;;  %403 = vmatprep.mubr.f32.mxu1 %v2479_v0  ;;  %v78_v46 = vrot.slane %v73_v42, %v77_v41  ;;  %v86_v47 = vrot.slane %v73_v42, %v85_v43  ;;  %v82_v48 = vrot.slane %v73_v42, %v81_v44  ;;  %s2056_s26 = sshll.u32 %s2481_s3, 4  ;;  %s2057_s26 = int_to_ptr.vmem [resolvable:$true] %s2056_s26 }
  0x43   :  { %v90_v49 = vrot.slane %v73_v42, %v89_v45  ;;  %s2446_s27 = scalar_lea.vmem %s2057_s26, 128  ;;  %p2451_p11 = scmp.lt.s32.totalorder %s2057_s26, %s2057_s26 }
  0x44   :  { %2123 = vmatpush1.bf16.msra.mxu0 %v2572_v35  ;;  %2131 = vmatpush1.bf16.msra.mxu1 %v2576_v37  ;;  %p2447_p10 = scmp.ne.s32.totalorder %s2057_s26, %s2446_s27  ;;  %p2452_p12 = scmp.lt.s32.totalorder %s2446_s27, %s2446_s27 }
  0x45   :  { %2133 = vmatprep.subr.bf16.mxu0 %v2555_v17  ;;  %2141 = vmatprep.subr.bf16.mxu1 %v2557_v21 }
  0x46   :  { %p2453_p13 = por %p2452_p12, %p2451_p11 }
  0x47   :  { %2068 = vmatmul.mubr.msk.f32.vlgmr.msra.gmra.mrb[2].mxu0 %vm264_vm2, %v245_v38  ;;  %2069 = vmatmul.mubr.msk.f32.vlgmr.msra.gmra.mrb[2].mxu1 %vm264_vm2, %v245_v38 }
  0x48   :  { %2135 = vmatpush1.bf16.msra.mxu0 %v2559_v22  ;;  %2143 = vmatpush1.bf16.msra.mxu1 %v2562_v26  ;;  %p2454_p0 = pnand %p2453_p13, %p2447_p10 }
  0x49   :  { %2137 = vmatprep.subr.bf16.mxu0 %v2566_v30  ;;  %2145 = vmatprep.subr.bf16.mxu1 %v2568_v31 }
  0x4a   :  { %558 = vmatprep.mubr.f32.mxu0 %v2479_v0  ;;  %629 = vmatprep.mubr.f32.mxu1 %v2479_v0 }
  0x4c   :  { %2139 = vmatpush1.bf16.msra.mxu0 %v2572_v35  ;;  %2147 = vmatpush1.bf16.msra.mxu1 %v2576_v37 }
  0x4d   :  { %2149 = vmatprep.subr.bf16.mxu0 %v2555_v17  ;;  %2157 = vmatprep.subr.bf16.mxu1 %v2557_v21 }
 0x112   :  { %v165_v50 = vpop.f32.mrb[0].mxu0  ;;  %v236_v54 = vpop.f32.mrb[0].mxu1 }
 0x113   :  { %v166_v53 = vadd.f32 %v165_v50, %v78_v46  ;;  %v167_v55 = vpop.f32.mrb[1].mxu0  ;;  %v237_v56 = vadd.f32 %v236_v54, %v86_v47  ;;  %v238_v58 = vpop.f32.mrb[1].mxu1 }
 0x114   :  { %v168_v57 = vadd.f32 %v167_v55, %v82_v48  ;;  %v239_v59 = vadd.f32 %v238_v58, %v90_v49 }
 0x115   :  { %241 = vst [vmem:[#allocation2] sm:$0xff] %v166_v53  ;;  %243 = vst [vmem:[#allocation2 + $0x10] sm:$0xff] %v237_v56 }
 0x116   :  { %242 = vst [vmem:[#allocation2 + $0x8] sm:$0xff] %v168_v57  ;;  %244 = vst [vmem:[#allocation2 + $0x18] sm:$0xff] %v239_v59 }
 0x11a   :  { %v334_v62 = vpop.f32.mrb[2].mxu0  ;;  %v405_v63 = vpop.f32.mrb[2].mxu1 }
 0x11b   :  { %v336_v1 = vpop.f32.mrb[3].mxu0  ;;  %v407_v3 = vpop.f32.mrb[3].mxu1 }
 0x11c   :  { %v414_v2 = vcombine.low %v334_v62, %v336_v1  ;;  %v415_v4 = vcombine.low %v405_v63, %v407_v3 }
 0x11d   :  { %v247_v9 = vld [vmem:[#allocation2] ss:$8 sm:$0xf]  ;;  %v474_v51 = vld [vmem:[#allocation2 + $0x1] ss:$8 sm:$0xf] }
 0x11e   :  { %v422_v5 = vrot.slane %v414_v2, %v2600_v61  ;;  %v429_v6 = vrot.slane %v415_v4, %v2600_v61 }
 0x120   :  { %v430_v7 = vcombine.low %v422_v5, %v429_v6 }
 0x122   :  { %v437_v8 = vrot.slane %v430_v7, %v2600_v61 }
 0x124   :  { %v439_v10 = vadd.f32 %v437_v8, %v247_v9 }
 0x126   :  { %v2070_v11 = vmul.f32 -1.442695, %v439_v10  ;;  %v447_v12 = vrot.slane %v439_v10, 1  ;;  %v458_v14 = vrot.slane %v439_v10, 3  ;;  %v455_v18 = vrot.slane %v439_v10, 2 }
 0x128   :  { %2252 = vpow2.f32 %v2070_v11  ;;  %v2071_v13 = vmul.f32 -1.442695, %v447_v12  ;;  %v2072_v15 = vmul.f32 -1.442695, %v458_v14 }
 0x12a   :  { %2254 = vpow2.f32 %v2071_v13 }
 0x12b   :  { %2256 = vpow2.f32 %v2072_v15 }
 0x132   :  { %v2253_v16 = vpop.eup %2252 }
 0x133   :  { %v443_v19 = vadd.f32 1.0, %v2253_v16 }
 0x134   :  { %v2255_v20 = vpop.eup %2254 }
 0x135   :  { %2258 = vrcp.f32 %v443_v19  ;;  %v452_v23 = vadd.f32 1.0, %v2255_v20  ;;  %v2257_v24 = vpop.eup %2256 }
 0x136   :  { %2260 = vtanh.f32 %v455_v18  ;;  %v463_v32 = vadd.f32 1.0, %v2257_v24 }
 0x137   :  { %2262 = vrcp.f32 %v452_v23 }
 0x138   :  { %2264 = vrcp.f32 %v463_v32 }
 0x13f   :  { %v2259_v25 = vpop.eup %2258 }
 0x140   :  { %v2261_v28 = vpop.eup %2260 }
 0x141   :  { %v2263_v29 = vpop.eup %2262  ;;  %v467_v34 = vmul.f32 %v2261_v28, %v2259_v25  ;;  %v699_v25 = vld [vmem:[#allocation2 + $0x2] ss:$8 sm:$0xf] }
 0x142   :  { %v466_v33 = vmul.f32 %v2263_v29, %v246_v27  ;;  %v2265_v38 = vpop.eup %2264 }
 0x144   :  { %v468_v36 = vadd.f32 %v467_v34, %v466_v33 }
 0x146   :  { %2266 = vtanh.f32 %v468_v36 }
 0x150   :  { %v2267_v39 = vpop.eup %2266 }
 0x151   :  { %v470_v40 = vmul.f32 %v2267_v39, %v2265_v38 }
 0x153   :  { %472 = vst.msk [vmem:[#allocation11] sm:$0x1] %vm61_vm0, %v470_v40  ;;  %2073 = vmatmul.mubr.msk.f32.vlgmr.msra.gmra.mrb[4].mxu0 %vm264_vm2, %v470_v40  ;;  %2074 = vmatmul.mubr.msk.f32.vlgmr.msra.gmra.mrb[4].mxu1 %vm264_vm2, %v470_v40 }
 0x154   :  { %2151 = vmatpush1.bf16.msra.mxu0 %v2559_v22  ;;  %2159 = vmatpush1.bf16.msra.mxu1 %v2562_v26 }
 0x155   :  { %2153 = vmatprep.subr.bf16.mxu0 %v2566_v30  ;;  %2161 = vmatprep.subr.bf16.mxu1 %v2568_v31 }
 0x156   :  { %783 = vmatprep.mubr.f32.mxu0 %v2479_v0  ;;  %854 = vmatprep.mubr.f32.mxu1 %v2479_v0 }
 0x158   :  { %2155 = vmatpush1.bf16.msra.mxu0 %v2572_v35  ;;  %2163 = vmatpush1.bf16.msra.mxu1 %v2576_v37 }
 0x159   :  { %2165 = vmatprep.subr.bf16.mxu0 %v2555_v17  ;;  %2173 = vmatprep.subr.bf16.mxu1 %v2557_v21 }
 0x226   :  { %v560_v41 = vpop.f32.mrb[4].mxu0  ;;  %v631_v42 = vpop.f32.mrb[4].mxu1 }
 0x227   :  { %v562_v43 = vpop.f32.mrb[5].mxu0  ;;  %v633_v44 = vpop.f32.mrb[5].mxu1 }
 0x228   :  { %v640_v45 = vcombine.low %v560_v41, %v562_v43  ;;  %v641_v46 = vcombine.low %v631_v42, %v633_v44 }
 0x22a   :  { %v648_v47 = vrot.slane %v640_v45, %v2600_v61  ;;  %v655_v48 = vrot.slane %v641_v46, %v2600_v61 }
 0x22c   :  { %v656_v49 = vcombine.low %v648_v47, %v655_v48 }
 0x22e   :  { %v663_v50 = vrot.slane %v656_v49, %v2600_v61 }
 0x230   :  { %v665_v52 = vadd.f32 %v663_v50, %v474_v51 }
 0x232   :  { %v2075_v53 = vmul.f32 -1.442695, %v665_v52  ;;  %v673_v54 = vrot.slane %v665_v52, 1  ;;  %v684_v56 = vrot.slane %v665_v52, 3  ;;  %v681_v59 = vrot.slane %v665_v52, 2 }
 0x234   :  { %2268 = vpow2.f32 %v2075_v53  ;;  %v2076_v55 = vmul.f32 -1.442695, %v673_v54  ;;  %v2077_v57 = vmul.f32 -1.442695, %v684_v56 }
 0x236   :  { %2270 = vpow2.f32 %v2076_v55 }
 0x237   :  { %2272 = vpow2.f32 %v2077_v57 }
 0x23e   :  { %v2269_v58 = vpop.eup %2268 }
 0x23f   :  { %v669_v60 = vadd.f32 1.0, %v2269_v58 }
 0x240   :  { %v2271_v62 = vpop.eup %2270 }
 0x241   :  { %2274 = vrcp.f32 %v669_v60  ;;  %v678_v63 = vadd.f32 1.0, %v2271_v62  ;;  %v2273_v1 = vpop.eup %2272 }
 0x242   :  { %2276 = vtanh.f32 %v681_v59  ;;  %v689_v5 = vadd.f32 1.0, %v2273_v1  ;;  %v924_v1 = vld [vmem:[#allocation2 + $0x3] ss:$8 sm:$0xf] }
 0x243   :  { %2278 = vrcp.f32 %v678_v63 }
 0x244   :  { %2280 = vrcp.f32 %v689_v5 }
 0x24b   :  { %v2275_v2 = vpop.eup %2274 }
 0x24c   :  { %v2277_v3 = vpop.eup %2276 }
 0x24d   :  { %v2279_v4 = vpop.eup %2278  ;;  %v693_v7 = vmul.f32 %v2277_v3, %v2275_v2 }
 0x24e   :  { %v692_v6 = vmul.f32 %v2279_v4, %v468_v36  ;;  %v2281_v9 = vpop.eup %2280 }
 0x250   :  { %v694_v8 = vadd.f32 %v693_v7, %v692_v6 }
 0x252   :  { %2282 = vtanh.f32 %v694_v8 }
 0x25c   :  { %v2283_v10 = vpop.eup %2282 }
 0x25d   :  { %v696_v11 = vmul.f32 %v2283_v10, %v2281_v9 }
 0x25f   :  { %697 = vst.msk [vmem:[#allocation11 + $0x1] sm:$0x1] %vm61_vm0, %v696_v11  ;;  %2078 = vmatmul.mubr.msk.f32.vlgmr.msra.gmra.mrb[6].mxu0 %vm264_vm2, %v696_v11  ;;  %2079 = vmatmul.mubr.msk.f32.vlgmr.msra.gmra.mrb[6].mxu1 %vm264_vm2, %v696_v11 }
 0x260   :  { %2167 = vmatpush1.bf16.msra.mxu0 %v2559_v22  ;;  %2175 = vmatpush1.bf16.msra.mxu1 %v2562_v26 }
 0x261   :  { %2169 = vmatprep.subr.bf16.mxu0 %v2566_v30  ;;  %2177 = vmatprep.subr.bf16.mxu1 %v2568_v31 }
 0x262   :  { %1008 = vmatprep.mubr.f32.mxu0 %v2479_v0  ;;  %1079 = vmatprep.mubr.f32.mxu1 %v2479_v0 }
 0x264   :  { %2171 = vmatpush1.bf16.msra.mxu0 %v2572_v35  ;;  %2179 = vmatpush1.bf16.msra.mxu1 %v2576_v37 }
 0x265   :  { %2181 = vmatprep.subr.bf16.mxu0 %v2555_v17  ;;  %2189 = vmatprep.subr.bf16.mxu1 %v2557_v21 }
 0x332   :  { %v785_v12 = vpop.f32.mrb[6].mxu0  ;;  %v856_v13 = vpop.f32.mrb[6].mxu1 }
 0x333   :  { %v787_v14 = vpop.f32.mrb[7].mxu0  ;;  %v858_v15 = vpop.f32.mrb[7].mxu1 }
 0x334   :  { %v865_v16 = vcombine.low %v785_v12, %v787_v14  ;;  %v866_v18 = vcombine.low %v856_v13, %v858_v15 }
 0x336   :  { %v873_v19 = vrot.slane %v865_v16, %v2600_v61  ;;  %v880_v20 = vrot.slane %v866_v18, %v2600_v61 }
 0x338   :  { %v881_v23 = vcombine.low %v873_v19, %v880_v20 }
 0x33a   :  { %v888_v24 = vrot.slane %v881_v23, %v2600_v61 }
 0x33c   :  { %v890_v27 = vadd.f32 %v888_v24, %v699_v25 }
 0x33e   :  { %v2080_v28 = vmul.f32 -1.442695, %v890_v27  ;;  %v898_v29 = vrot.slane %v890_v27, 1  ;;  %v909_v33 = vrot.slane %v890_v27, 3  ;;  %v906_v38 = vrot.slane %v890_v27, 2 }
 0x340   :  { %2284 = vpow2.f32 %v2080_v28  ;;  %v2081_v32 = vmul.f32 -1.442695, %v898_v29  ;;  %v2082_v34 = vmul.f32 -1.442695, %v909_v33 }
 0x342   :  { %2286 = vpow2.f32 %v2081_v32 }
 0x343   :  { %2288 = vpow2.f32 %v2082_v34 }
 0x34a   :  { %v2285_v36 = vpop.eup %2284 }
 0x34b   :  { %v894_v39 = vadd.f32 1.0, %v2285_v36 }
 0x34c   :  { %v2287_v40 = vpop.eup %2286 }
 0x34d   :  { %2290 = vrcp.f32 %v894_v39  ;;  %v903_v41 = vadd.f32 1.0, %v2287_v40  ;;  %v2289_v42 = vpop.eup %2288 }
 0x34e   :  { %2292 = vtanh.f32 %v906_v38  ;;  %v914_v46 = vadd.f32 1.0, %v2289_v42  ;;  %v1149_v42 = vld [vmem:[#allocation2 + $0x4] ss:$8 sm:$0xf] }
 0x34f   :  { %2294 = vrcp.f32 %v903_v41 }
 0x350   :  { %2296 = vrcp.f32 %v914_v46 }
 0x357   :  { %v2291_v43 = vpop.eup %2290 }
 0x358   :  { %v2293_v44 = vpop.eup %2292 }
 0x359   :  { %v2295_v45 = vpop.eup %2294  ;;  %v918_v48 = vmul.f32 %v2293_v44, %v2291_v43 }
 0x35a   :  { %v917_v47 = vmul.f32 %v2295_v45, %v694_v8  ;;  %v2297_v50 = vpop.eup %2296 }
 0x35c   :  { %v919_v49 = vadd.f32 %v918_v48, %v917_v47 }
 0x35e   :  { %2298 = vtanh.f32 %v919_v49 }
 0x368   :  { %v2299_v51 = vpop.eup %2298 }
 0x369   :  { %v921_v52 = vmul.f32 %v2299_v51, %v2297_v50 }
 0x36b   :  { %922 = vst.msk [vmem:[#allocation11 + $0x2] sm:$0x1] %vm61_vm0, %v921_v52  ;;  %2083 = vmatmul.mubr.msk.f32.vlgmr.msra.gmra.mrb[8].mxu0 %vm264_vm2, %v921_v52  ;;  %2084 = vmatmul.mubr.msk.f32.vlgmr.msra.gmra.mrb[8].mxu1 %vm264_vm2, %v921_v52 }
 0x36c   :  { %2183 = vmatpush1.bf16.msra.mxu0 %v2559_v22  ;;  %2191 = vmatpush1.bf16.msra.mxu1 %v2562_v26 }
 0x36d   :  { %2185 = vmatprep.subr.bf16.mxu0 %v2566_v30  ;;  %2193 = vmatprep.subr.bf16.mxu1 %v2568_v31 }
 0x36e   :  { %1233 = vmatprep.mubr.f32.mxu0 %v2479_v0  ;;  %1304 = vmatprep.mubr.f32.mxu1 %v2479_v0 }
 0x370   :  { %2187 = vmatpush1.bf16.msra.mxu0 %v2572_v35  ;;  %2195 = vmatpush1.bf16.msra.mxu1 %v2576_v37 }
 0x371   :  { %2197 = vmatprep.subr.bf16.mxu0 %v2555_v17  ;;  %2205 = vmatprep.subr.bf16.mxu1 %v2557_v21 }
 0x43e   :  { %v1010_v53 = vpop.f32.mrb[8].mxu0  ;;  %v1081_v54 = vpop.f32.mrb[8].mxu1 }
 0x43f   :  { %v1012_v55 = vpop.f32.mrb[9].mxu0  ;;  %v1083_v56 = vpop.f32.mrb[9].mxu1 }
 0x440   :  { %v1090_v57 = vcombine.low %v1010_v53, %v1012_v55  ;;  %v1091_v58 = vcombine.low %v1081_v54, %v1083_v56 }
 0x442   :  { %v1098_v59 = vrot.slane %v1090_v57, %v2600_v61  ;;  %v1105_v60 = vrot.slane %v1091_v58, %v2600_v61 }
 0x444   :  { %v1106_v62 = vcombine.low %v1098_v59, %v1105_v60 }
 0x446   :  { %v1113_v63 = vrot.slane %v1106_v62, %v2600_v61 }
 0x448   :  { %v1115_v2 = vadd.f32 %v1113_v63, %v924_v1 }
 0x44a   :  { %v2085_v3 = vmul.f32 -1.442695, %v1115_v2  ;;  %v1123_v4 = vrot.slane %v1115_v2, 1  ;;  %v1134_v6 = vrot.slane %v1115_v2, 3  ;;  %v1131_v9 = vrot.slane %v1115_v2, 2 }
 0x44c   :  { %2300 = vpow2.f32 %v2085_v3  ;;  %v2086_v5 = vmul.f32 -1.442695, %v1123_v4  ;;  %v2087_v7 = vmul.f32 -1.442695, %v1134_v6 }
 0x44e   :  { %2302 = vpow2.f32 %v2086_v5 }
 0x44f   :  { %2304 = vpow2.f32 %v2087_v7  ;;  %v1374_v7 = vld [vmem:[#allocation2 + $0x5] ss:$8 sm:$0xf] }
 0x456   :  { %v2301_v8 = vpop.eup %2300 }
 0x457   :  { %v1119_v10 = vadd.f32 1.0, %v2301_v8 }
 0x458   :  { %v2303_v11 = vpop.eup %2302 }
 0x459   :  { %2306 = vrcp.f32 %v1119_v10  ;;  %v1128_v12 = vadd.f32 1.0, %v2303_v11  ;;  %v2305_v13 = vpop.eup %2304 }
 0x45a   :  { %2308 = vtanh.f32 %v1131_v9  ;;  %v1139_v18 = vadd.f32 1.0, %v2305_v13 }
 0x45b   :  { %2310 = vrcp.f32 %v1128_v12 }
 0x45c   :  { %2312 = vrcp.f32 %v1139_v18 }
 0x463   :  { %v2307_v14 = vpop.eup %2306 }
 0x464   :  { %v2309_v15 = vpop.eup %2308 }
 0x465   :  { %v2311_v16 = vpop.eup %2310  ;;  %v1143_v20 = vmul.f32 %v2309_v15, %v2307_v14 }
 0x466   :  { %v1142_v19 = vmul.f32 %v2311_v16, %v919_v49  ;;  %v2313_v24 = vpop.eup %2312 }
 0x468   :  { %v1144_v23 = vadd.f32 %v1143_v20, %v1142_v19 }
 0x46a   :  { %2314 = vtanh.f32 %v1144_v23 }
 0x474   :  { %v2315_v25 = vpop.eup %2314 }
 0x475   :  { %v1146_v27 = vmul.f32 %v2315_v25, %v2313_v24 }
 0x477   :  { %1147 = vst.msk [vmem:[#allocation11 + $0x3] sm:$0x1] %vm61_vm0, %v1146_v27  ;;  %2088 = vmatmul.mubr.msk.f32.vlgmr.msra.gmra.mrb[10].mxu0 %vm264_vm2, %v1146_v27  ;;  %2089 = vmatmul.mubr.msk.f32.vlgmr.msra.gmra.mrb[10].mxu1 %vm264_vm2, %v1146_v27 }
 0x478   :  { %2199 = vmatpush1.bf16.msra.mxu0 %v2559_v22  ;;  %2207 = vmatpush1.bf16.msra.mxu1 %v2562_v26 }
 0x479   :  { %2201 = vmatprep.subr.bf16.mxu0 %v2566_v30  ;;  %2209 = vmatprep.subr.bf16.mxu1 %v2568_v31 }
 0x47a   :  { %1458 = vmatprep.mubr.f32.mxu0 %v2479_v0  ;;  %1529 = vmatprep.mubr.f32.mxu1 %v2479_v0 }
 0x47c   :  { %2203 = vmatpush1.bf16.msra.mxu0 %v2572_v35  ;;  %2211 = vmatpush1.bf16.msra.mxu1 %v2576_v37 }
 0x47d   :  { %2213 = vmatprep.subr.bf16.mxu0 %v2555_v17  ;;  %2221 = vmatprep.subr.bf16.mxu1 %v2557_v21 }
 0x54a   :  { %v1235_v28 = vpop.f32.mrb[10].mxu0  ;;  %v1306_v29 = vpop.f32.mrb[10].mxu1 }
 0x54b   :  { %v1237_v32 = vpop.f32.mrb[11].mxu0  ;;  %v1308_v33 = vpop.f32.mrb[11].mxu1 }
 0x54c   :  { %v1315_v34 = vcombine.low %v1235_v28, %v1237_v32  ;;  %v1316_v36 = vcombine.low %v1306_v29, %v1308_v33 }
 0x54e   :  { %v1323_v38 = vrot.slane %v1315_v34, %v2600_v61  ;;  %v1330_v39 = vrot.slane %v1316_v36, %v2600_v61  ;;  %v1826_v34 = vld [vmem:[#allocation10 + $0x8] sm:$0xff] }
 0x54f   :  { %v1830_v36 = vld [vmem:[#allocation10 + $0x28] sm:$0xff] }
 0x550   :  { %v1331_v40 = vcombine.low %v1323_v38, %v1330_v39  ;;  %v1828_v38 = vld [vmem:[#allocation10 + $0x18] sm:$0xff]  ;;  %v2228_v39 = vpack.c.bf16 %v1830_v36, %v1826_v34 }
 0x552   :  { %v1338_v41 = vrot.slane %v1331_v40, %v2600_v61  ;;  %v1832_v40 = vld [vmem:[#allocation10 + $0x38] sm:$0xff] }
 0x554   :  { %v1340_v43 = vadd.f32 %v1338_v41, %v1149_v42  ;;  %v1825_v41 = vld [vmem:[#allocation10] sm:$0xff] }
 0x555   :  { %v1829_v42 = vld [vmem:[#allocation10 + $0x20] sm:$0xff] }
 0x556   :  { %v2090_v44 = vmul.f32 -1.442695, %v1340_v43  ;;  %v1348_v45 = vrot.slane %v1340_v43, 1  ;;  %v1359_v21 = vrot.slane %v1340_v43, 3  ;;  %v1356_v48 = vrot.slane %v1340_v43, 2 }
 0x557   :  { %v2236_v43 = vpack.c.bf16 %v1832_v40, %v1828_v38  ;;  %v1824_v40 = vld [vmem:[#allocation2 + $0x7] ss:$8 sm:$0xf] }
 0x558   :  { %2316 = vpow2.f32 %v2090_v44  ;;  %v2091_v17 = vmul.f32 -1.442695, %v1348_v45  ;;  %v2092_v46 = vmul.f32 -1.442695, %v1359_v21  ;;  %v2230_v44 = vpack.c.bf16 %v1829_v42, %v1825_v41  ;;  %v1827_v45 = vld [vmem:[#allocation10 + $0x10] sm:$0xff]  ;;  %v1834_v21 = vld [vmem:[#allocation10 + $0x48] sm:$0xff] }
 0x55a   :  { %2318 = vpow2.f32 %v2091_v17  ;;  %v1831_v17 = vld [vmem:[#allocation10 + $0x30] sm:$0xff] }
 0x55b   :  { %2320 = vpow2.f32 %v2092_v46  ;;  %v2238_v46 = vpack.c.bf16 %v1831_v17, %v1827_v45 }
 0x562   :  { %v2317_v47 = vpop.eup %2316 }
 0x563   :  { %v1344_v49 = vadd.f32 1.0, %v2317_v47  ;;  %v1838_v47 = vld [vmem:[#allocation10 + $0x68] sm:$0xff] }
 0x564   :  { %v2319_v50 = vpop.eup %2318 }
 0x565   :  { %2322 = vrcp.f32 %v1344_v49  ;;  %v1353_v51 = vadd.f32 1.0, %v2319_v50  ;;  %v2321_v52 = vpop.eup %2320  ;;  %v1840_v49 = vld [vmem:[#allocation10 + $0x78] sm:$0xff] }
 0x566   :  { %2324 = vtanh.f32 %v1356_v48  ;;  %v1364_v56 = vadd.f32 1.0, %v2321_v52  ;;  %v1836_v48 = vld [vmem:[#allocation10 + $0x58] sm:$0xff]  ;;  %v1837_v52 = vld [vmem:[#allocation10 + $0x60] sm:$0xff] }
 0x567   :  { %2326 = vrcp.f32 %v1353_v51  ;;  %v2240_v50 = vpack.c.bf16 %v1840_v49, %v1836_v48  ;;  %v1833_v51 = vld [vmem:[#allocation10 + $0x40] sm:$0xff] }
 0x568   :  { %2328 = vrcp.f32 %v1364_v56 }
 0x56f   :  { %v2323_v53 = vpop.eup %2322 }
 0x570   :  { %v2325_v54 = vpop.eup %2324 }
 0x571   :  { %v2327_v55 = vpop.eup %2326  ;;  %v1368_v58 = vmul.f32 %v2325_v54, %v2323_v53  ;;  %v1835_v53 = vld [vmem:[#allocation10 + $0x50] sm:$0xff]  ;;  %v2234_v54 = vpack.c.bf16 %v1837_v52, %v1833_v51 }
 0x572   :  { %v1367_v57 = vmul.f32 %v2327_v55, %v1144_v23  ;;  %v2329_v60 = vpop.eup %2328  ;;  %v1839_v55 = vld [vmem:[#allocation10 + $0x70] sm:$0xff] }
 0x573   :  { %v2242_v56 = vpack.c.bf16 %v1839_v55, %v1835_v53 }
 0x574   :  { %v1369_v59 = vadd.f32 %v1368_v58, %v1367_v57 }
 0x576   :  { %2330 = vtanh.f32 %v1369_v59 }
 0x580   :  { %v2331_v62 = vpop.eup %2330 }
 0x581   :  { %v1371_v63 = vmul.f32 %v2331_v62, %v2329_v60 }
 0x583   :  { %1372 = vst.msk [vmem:[#allocation11 + $0x4] sm:$0x1] %vm61_vm0, %v1371_v63  ;;  %2093 = vmatmul.mubr.msk.f32.vlgmr.msra.gmra.mrb[12].mxu0 %vm264_vm2, %v1371_v63  ;;  %2094 = vmatmul.mubr.msk.f32.vlgmr.msra.gmra.mrb[12].mxu1 %vm264_vm2, %v1371_v63 }
 0x584   :  { %2215 = vmatpush1.bf16.msra.mxu0 %v2559_v22  ;;  %2223 = vmatpush1.bf16.msra.mxu1 %v2562_v26 }
 0x585   :  { %2217 = vmatprep.subr.bf16.mxu0 %v2566_v30  ;;  %2225 = vmatprep.subr.bf16.mxu1 %v2568_v31 }
 0x586   :  { %1683 = vmatprep.mubr.f32.mxu0 %v2479_v0  ;;  %1754 = vmatprep.mubr.f32.mxu1 %v2479_v0 }
 0x588   :  { %2219 = vmatpush1.bf16.msra.mxu0 %v2572_v35  ;;  %2227 = vmatpush1.bf16.msra.mxu1 %v2576_v37 }
 0x589   :  { %2229 = vmatprep.subr.bf16.mxu0 %v2228_v39  ;;  %2237 = vmatprep.subr.bf16.mxu1 %v2236_v43 }
 0x656   :  { %v1460_v1 = vpop.f32.mrb[12].mxu0  ;;  %v1531_v2 = vpop.f32.mrb[12].mxu1 }
 0x657   :  { %v1462_v3 = vpop.f32.mrb[13].mxu0  ;;  %v1533_v4 = vpop.f32.mrb[13].mxu1 }
 0x658   :  { %v1540_v5 = vcombine.low %v1460_v1, %v1462_v3  ;;  %v1541_v22 = vcombine.low %v1531_v2, %v1533_v4 }
 0x65a   :  { %v1548_v26 = vrot.slane %v1540_v5, %v2600_v61  ;;  %v1555_v30 = vrot.slane %v1541_v22, %v2600_v61  ;;  %v1599_v5 = vld [vmem:[#allocation2 + $0x6] ss:$8 sm:$0xf] }
 0x65c   :  { %v1556_v6 = vcombine.low %v1548_v26, %v1555_v30 }
 0x65e   :  { %v1563_v31 = vrot.slane %v1556_v6, %v2600_v61 }
 0x660   :  { %v1565_v8 = vadd.f32 %v1563_v31, %v1374_v7 }
 0x662   :  { %v2095_v9 = vmul.f32 -1.442695, %v1565_v8  ;;  %v1573_v10 = vrot.slane %v1565_v8, 1  ;;  %v1584_v37 = vrot.slane %v1565_v8, 3  ;;  %v1581_v13 = vrot.slane %v1565_v8, 2 }
 0x664   :  { %2332 = vpow2.f32 %v2095_v9  ;;  %v2096_v35 = vmul.f32 -1.442695, %v1573_v10  ;;  %v2097_v11 = vmul.f32 -1.442695, %v1584_v37 }
 0x666   :  { %2334 = vpow2.f32 %v2096_v35 }
 0x667   :  { %2336 = vpow2.f32 %v2097_v11 }
 0x66e   :  { %v2333_v12 = vpop.eup %2332 }
 0x66f   :  { %v1569_v14 = vadd.f32 1.0, %v2333_v12 }
 0x670   :  { %v2335_v15 = vpop.eup %2334 }
 0x671   :  { %2338 = vrcp.f32 %v1569_v14  ;;  %v1578_v16 = vadd.f32 1.0, %v2335_v15  ;;  %v2337_v18 = vpop.eup %2336 }
 0x672   :  { %2340 = vtanh.f32 %v1581_v13  ;;  %v1589_v24 = vadd.f32 1.0, %v2337_v18 }
 0x673   :  { %2342 = vrcp.f32 %v1578_v16 }
 0x674   :  { %2344 = vrcp.f32 %v1589_v24 }
 0x67b   :  { %v2339_v19 = vpop.eup %2338 }
 0x67c   :  { %v2341_v20 = vpop.eup %2340 }
 0x67d   :  { %v2343_v23 = vpop.eup %2342  ;;  %v1593_v27 = vmul.f32 %v2341_v20, %v2339_v19 }
 0x67e   :  { %v1592_v25 = vmul.f32 %v2343_v23, %v1369_v59  ;;  %v2345_v29 = vpop.eup %2344 }
 0x680   :  { %v2683_v28 = vadd.f32 %v1593_v27, %v1592_v25 }
 0x682   :  { %2346 = vtanh.f32 %v2683_v28 }
 0x68c   :  { %v2347_v32 = vpop.eup %2346 }
 0x68d   :  { %v1596_v33 = vmul.f32 %v2347_v32, %v2345_v29 }
 0x68f   :  { %1597 = vst.msk [vmem:[#allocation11 + $0x5] sm:$0x1] %vm61_vm0, %v1596_v33  ;;  %2098 = vmatmul.mubr.msk.f32.vlgmr.msra.gmra.mrb[14].mxu0 %vm264_vm2, %v1596_v33  ;;  %2099 = vmatmul.mubr.msk.f32.vlgmr.msra.gmra.mrb[14].mxu1 %vm264_vm2, %v1596_v33 }
 0x690   :  { %1908 = vmatprep.mubr.f32.mxu0 %v2479_v0  ;;  %1979 = vmatprep.mubr.f32.mxu1 %v2479_v0  ;;  %v2232_v0 = vpack.c.bf16 %v1838_v47, %v1834_v21 }
 0x691   :  { %2231 = vmatpush1.bf16.msra.mxu0 %v2230_v44  ;;  %2239 = vmatpush1.bf16.msra.mxu1 %v2238_v46 }
 0x692   :  { %2233 = vmatprep.subr.bf16.mxu0 %v2232_v0  ;;  %2241 = vmatprep.subr.bf16.mxu1 %v2240_v50 }
 0x695   :  { %2235 = vmatpush1.bf16.msra.mxu0 %v2234_v54  ;;  %2243 = vmatpush1.bf16.msra.mxu1 %v2242_v56 }
 0x762   :  { %v1685_v57 = vpop.f32.mrb[14].mxu0  ;;  %v1756_v58 = vpop.f32.mrb[14].mxu1 }
 0x763   :  { %v1687_v59 = vpop.f32.mrb[15].mxu0  ;;  %v1758_v60 = vpop.f32.mrb[15].mxu1 }
 0x764   :  { %v1765_v62 = vcombine.low %v1685_v57, %v1687_v59  ;;  %v1766_v63 = vcombine.low %v1756_v58, %v1758_v60 }
 0x766   :  { %v1773_v1 = vrot.slane %v1765_v62, %v2600_v61  ;;  %v1780_v2 = vrot.slane %v1766_v63, %v2600_v61 }
 0x768   :  { %v1781_v3 = vcombine.low %v1773_v1, %v1780_v2 }
 0x76a   :  { %v1788_v4 = vrot.slane %v1781_v3, %v2600_v61 }
 0x76c   :  { %v1790_v22 = vadd.f32 %v1788_v4, %v1599_v5 }
 0x76e   :  { %v2100_v26 = vmul.f32 -1.442695, %v1790_v22  ;;  %v1798_v30 = vrot.slane %v1790_v22, 1  ;;  %v1809_v31 = vrot.slane %v1790_v22, 3  ;;  %v1806_v9 = vrot.slane %v1790_v22, 2 }
 0x770   :  { %2348 = vpow2.f32 %v2100_v26  ;;  %v2101_v6 = vmul.f32 -1.442695, %v1798_v30  ;;  %v2102_v7 = vmul.f32 -1.442695, %v1809_v31 }
 0x772   :  { %2350 = vpow2.f32 %v2101_v6 }
 0x773   :  { %2352 = vpow2.f32 %v2102_v7 }
 0x77a   :  { %v2349_v8 = vpop.eup %2348 }
 0x77b   :  { %v1794_v10 = vadd.f32 1.0, %v2349_v8 }
 0x77c   :  { %v2351_v35 = vpop.eup %2350 }
 0x77d   :  { %2354 = vrcp.f32 %v1794_v10  ;;  %v1803_v37 = vadd.f32 1.0, %v2351_v35  ;;  %v2353_v11 = vpop.eup %2352 }
 0x77e   :  { %2356 = vtanh.f32 %v1806_v9  ;;  %v1814_v15 = vadd.f32 1.0, %v2353_v11 }
 0x77f   :  { %2358 = vrcp.f32 %v1803_v37 }
 0x780   :  { %2360 = vrcp.f32 %v1814_v15 }
 0x787   :  { %v2355_v12 = vpop.eup %2354 }
 0x788   :  { %v2357_v13 = vpop.eup %2356 }
 0x789   :  { %v2359_v14 = vpop.eup %2358  ;;  %v1818_v18 = vmul.f32 %v2357_v13, %v2355_v12 }
 0x78a   :  { %v1817_v16 = vmul.f32 %v2359_v14, %v2683_v28  ;;  %v2361_v20 = vpop.eup %2360 }
 0x78c   :  { %v1819_v19 = vadd.f32 %v1818_v18, %v1817_v16 }
 0x78e   :  { %2362 = vtanh.f32 %v1819_v19 }
 0x798   :  { %v2363_v23 = vpop.eup %2362 }
 0x799   :  { %v1821_v24 = vmul.f32 %v2363_v23, %v2361_v20 }
 0x79b   :  { %1822 = vst.msk [vmem:[#allocation11 + $0x6] sm:$0x1] %vm61_vm0, %v1821_v24  ;;  %2103 = vmatmul.mubr.msk.f32.vlgmr.msra.gmra.mrb[16].mxu0 %vm264_vm2, %v1821_v24  ;;  %2104 = vmatmul.mubr.msk.f32.vlgmr.msra.gmra.mrb[16].mxu1 %vm264_vm2, %v1821_v24 }
 0x86e   :  { %v1910_v25 = vpop.f32.mrb[16].mxu0  ;;  %v1981_v27 = vpop.f32.mrb[16].mxu1 }
 0x86f   :  { %v1912_v29 = vpop.f32.mrb[17].mxu0  ;;  %v1983_v32 = vpop.f32.mrb[17].mxu1 }
 0x870   :  { %v1990_v33 = vcombine.low %v1910_v25, %v1912_v29  ;;  %v1991_v34 = vcombine.low %v1981_v27, %v1983_v32 }
 0x872   :  { %v1998_v28 = vrot.slane %v1990_v33, %v2600_v61  ;;  %v2005_v36 = vrot.slane %v1991_v34, %v2600_v61 }
 0x874   :  { %v2006_v38 = vcombine.low %v1998_v28, %v2005_v36 }
 0x876   :  { %v2013_v39 = vrot.slane %v2006_v38, %v2600_v61 }
 0x878   :  { %v2015_v41 = vadd.f32 %v2013_v39, %v1824_v40 }
 0x87a   :  { %v2105_v42 = vmul.f32 -1.442695, %v2015_v41  ;;  %v2023_v43 = vrot.slane %v2015_v41, 1  ;;  %v2034_v45 = vrot.slane %v2015_v41, 3  ;;  %v2031_v46 = vrot.slane %v2015_v41, 2 }
 0x87c   :  { %2364 = vpow2.f32 %v2105_v42  ;;  %v2106_v44 = vmul.f32 -1.442695, %v2023_v43  ;;  %v2107_v17 = vmul.f32 -1.442695, %v2034_v45 }
 0x87e   :  { %2366 = vpow2.f32 %v2106_v44 }
 0x87f   :  { %2368 = vpow2.f32 %v2107_v17 }
 0x886   :  { %v2365_v21 = vpop.eup %2364 }
 0x887   :  { %v2019_v47 = vadd.f32 1.0, %v2365_v21 }
 0x888   :  { %v2367_v48 = vpop.eup %2366 }
 0x889   :  { %2370 = vrcp.f32 %v2019_v47  ;;  %v2028_v49 = vadd.f32 1.0, %v2367_v48  ;;  %v2369_v0 = vpop.eup %2368 }
 0x88a   :  { %2372 = vtanh.f32 %v2031_v46  ;;  %v2039_v52 = vadd.f32 1.0, %v2369_v0 }
 0x88b   :  { %2374 = vrcp.f32 %v2028_v49 }
 0x88c   :  { %2376 = vrcp.f32 %v2039_v52 }
 0x893   :  { %v2371_v61 = vpop.eup %2370 }
 0x894   :  { %v2373_v50 = vpop.eup %2372 }
 0x895   :  { %v2375_v51 = vpop.eup %2374  ;;  %v2043_v54 = vmul.f32 %v2373_v50, %v2371_v61 }
 0x896   :  { %v2042_v53 = vmul.f32 %v2375_v51, %v1819_v19  ;;  %v2377_v56 = vpop.eup %2376 }
 0x898   :  { %v2044_v55 = vadd.f32 %v2043_v54, %v2042_v53 }
 0x89a   :  { %2378 = vtanh.f32 %v2044_v55  ;;  %2049 = vst.msk [vmem:[#allocation4] sm:$0x1] %vm61_vm0, %v2044_v55 }
 0x8a4   :  { %v2379_v57 = vpop.eup %2378 }
 0x8a5   :  { %v2046_v58 = vmul.f32 %v2379_v57, %v2377_v56 }
 0x8a7   :  { %2047 = vst.msk [vmem:[#allocation11 + $0x7] sm:$0x1] %vm61_vm0, %v2046_v58  ;;  %2048 = vst.msk [vmem:[#allocation3] sm:$0x1] %vm61_vm0, %v2046_v58 }
 0x8a8   :  { %2457 = shalt.err (!%p2454_p0)
}
 0x8a9   :  { %s2458_s30 = scalar_lea.hbm %s2720_s4, 128 }
 0x8aa   :  { %p2459_p1 = scmp.ne.s32.totalorder %s2720_s4, %s2458_s30  ;;  %p2462_p2 = scmp.lt.u32.totalorder %s2458_s30, %s2720_s4 }
 0x8ac   :  { %p2464_p3 = pnand %p2462_p2, %p2459_p1 }
 0x8ae   :  { %2467 = shalt.err (!%p2464_p3)
}
 0x8af   :  { %2059 = dma.vmem_to_hbm [thread:$0]  %s2057_s26, 128, %s2720_s4, [#allocation7]  }
 0x8b0   :  { %2472 = dma.done.wait [#allocation7], 128  }
 0x8b1   :  { %2473 = vsyncadd [#allocation7], 4294967168 }
 0x8b2   :  { %2063 = vsyncpa [#allocation6], 1 }
 0x8b3   :  { %2064 = vsyncpa [#allocation9], 1 }
 0x8b4   :  { %2065 = vsyncpa [#allocation7], 1 }

</bundles_post_ra>
